<compile_context>
chip_gen: v5e
topology: v5e:2x2
jax: 0.10.0
libtpu: 0.0.40
codegen_flags: <defaults>
</compile_context>

<pallas_src>
import functools
import math

import jax
import jax.numpy as jnp
from jax.experimental import pallas as pl
from jax.experimental.pallas import tpu as pltpu


# ----------------------------------------------------------------------------
# Fused whole-layer kernel (one grid step per Bt batch elements)
# ----------------------------------------------------------------------------
def _gcat_layer_kernel(mem_ref, clip_ref, *rest, num_heads, eps, use_bf16,
                       activation, return_weights):
  (wq_e_ref, bq_e_ref, wkv_e_ref, bkv_e_ref, wo_e_ref, bo_e_ref,
   wq_p_ref, bq_p_ref, wkv_p_ref, bkv_p_ref, wo_p_ref, bo_p_ref,
   g_att_ref, b_att_ref,
   conv1_w_ref, conv1_b_ref, conv2_w_ref, conv2_b_ref,
   lin1_w_ref, lin1_b_ref, lin2_w_ref, lin2_b_ref,
   g_lin_ref, b_lin_ref) = rest[:24]
  if return_weights:
    out_ref, w_ref, w2_ref = rest[24:27]
  else:
    out_ref = rest[24]
    w_ref = w2_ref = None

  Bt, Lq, E = mem_ref.shape
  Lkv = clip_ref.shape[1]
  H = num_heads
  D = E // H
  half_q = Lq // 2
  scale = 1.0 / math.sqrt(D)
  f32 = jnp.float32
  cdt = jnp.bfloat16 if use_bf16 else jnp.float32

  def dot_nn(a, b):                       # (M,K) @ (K,N) -> (M,N), f32 accumulate
    return jnp.dot(a.astype(cdt), b.astype(cdt), preferred_element_type=f32)

  def layer_norm(x, g, b):                # f32 elementwise math (v5e-safe)
    mu = jnp.mean(x, axis=-1, keepdims=True)
    var = jnp.mean(jnp.square(x - mu), axis=-1, keepdims=True)
    return (x - mu) * jax.lax.rsqrt(var + eps) * g + b

  def act_att(x):
    if activation == "gelu":
      return jax.nn.gelu(x)
    return jnp.maximum(x, 0.0)            # default: relu

  def mha(xq_flat, xkv_flat, lq, lkv, wq, bq, wkv, bkv, wo, bo):
    # Batch-flattened packed projections: one wide matmul (M = Bt*L) each.
    q = dot_nn(xq_flat, wq) + bq                       # (Bt*lq, E)    f32
    kv = dot_nn(xkv_flat, wkv) + bkv                   # (Bt*lkv, 2E)  f32
    q3 = q.reshape(Bt, lq, E)
    kv3 = kv.reshape(Bt, lkv, 2 * E)
    o_heads = []
    w_acc = jnp.zeros((Bt, lq, lkv), f32) if return_weights else None
    for h in range(H):                                 # static unroll
      lo, hi = h * D, (h + 1) * D
      # TODO(synk): process head pairs when D == 64 so slices land on 128-lane boundaries.
      qh = q3[:, :, lo:hi].astype(cdt)
      kh = kv3[:, :, lo:hi].astype(cdt)
      vh = kv3[:, :, E + lo:E + hi].astype(cdt)
      s = jnp.einsum("bqd,bkd->bqk", qh, kh,
                     preferred_element_type=f32) * scale       # (Bt, lq, lkv) f32
      m = jnp.max(s, axis=-1, keepdims=True)
      p = jnp.exp(s - m)
      p = p * pl.reciprocal(jnp.sum(p, axis=-1, keepdims=True), approx=True)
      if return_weights:
        w_acc = w_acc + p                              # head-averaged weights
      o_heads.append(jnp.einsum("bqk,bkd->bqd", p.astype(cdt), vh,
                                preferred_element_type=f32))
    # ONE full-depth (K = E) output projection over all heads & batch rows at once.
    o = jnp.concatenate(o_heads, axis=-1).reshape(Bt * lq, E)
    out = dot_nn(o, wo) + bo                           # (Bt*lq, E) f32
    if return_weights:
      w_acc = w_acc * (1.0 / H)
    return out, w_acc

  mem = mem_ref[...]                                   # (Bt, Lq, E)
  clip = clip_ref[...]                                 # (Bt, Lkv, E)
  mem_flat = mem.reshape(Bt * Lq, E)
  clip_flat = clip.reshape(Bt * Lkv, E)

  # --- cross_att_E: query = memory, key/value = clip_context -----------------
  att_e, w_e = mha(mem_flat, clip_flat, Lq, Lkv,
                   wq_e_ref[...], bq_e_ref[...], wkv_e_ref[...], bkv_e_ref[...],
                   wo_e_ref[...], bo_e_ref[...])
  att_e = layer_norm(mem_flat + att_e, g_att_ref[...], b_att_ref[...])

  # --- cross_att_P: query = clip_context, key/value = memory -----------------
  att_p, w_p = mha(clip_flat, mem_flat, Lkv, Lq,
                   wq_p_ref[...], bq_p_ref[...], wkv_p_ref[...], bkv_p_ref[...],
                   wo_p_ref[...], bo_p_ref[...])
  att_p = layer_norm(clip_flat + att_p, g_att_ref[...], b_att_ref[...])

  # --- conv1/conv2 (k=1 over the seq/"channel" dim) + gcat, assembled directly
  #     into the flattened (Bt*Lq, E) FFN operand (no VMEM scratch round trip).
  att_e3 = att_e.reshape(Bt, Lq, E)
  att_p3 = att_p.reshape(Bt, Lkv, E)
  gcat_parts = []
  for b in range(Bt):                                  # static unroll, Bt small
    ce = act_att(dot_nn(conv1_w_ref[...], att_e3[b]) + conv1_b_ref[...])  # (Lq//2, E)
    cp = act_att(dot_nn(conv2_w_ref[...], att_p3[b]) + conv2_b_ref[...])  # (Lkv//2, E)
    gcat_parts.append(mem[b, :half_q, :] * ce)
    gcat_parts.append(mem[b, half_q:, :] * cp)
  gcat = jnp.concatenate(gcat_parts, axis=0)           # (Bt*Lq, E)

  # --- fused FFN + residual + LayerNorm on batch-flattened operands ----------
  hmid = jnp.maximum(dot_nn(gcat, lin1_w_ref[...]) + lin1_b_ref[...], 0.0)
  y = dot_nn(hmid, lin2_w_ref[...]) + lin2_b_ref[...]
  y = layer_norm(gcat + y, g_lin_ref[...], b_lin_ref[...])

  out_ref[...] = y.reshape(Bt, Lq, E)
  if return_weights:
    w_ref[...] = w_e
    w2_ref[...] = w_p


# ----------------------------------------------------------------------------
# Wrapper
# ----------------------------------------------------------------------------
def _choose_block_batch(B, Lq, target_rows=256):
  """Largest divisor Bt of B such that Bt*Lq is near the MXU M target, while
  keeping >= 2 grid steps (dual-TensorCore v7x) whenever B >= 2."""
  want = max(1, -(-target_rows // max(Lq, 1)))          # ceil(target / Lq)
  best = 1
  for bt in range(1, B + 1):
    if B % bt:
      continue
    if B >= 2 and B // bt < 2:
      continue
    if bt <= want:
      best = bt
  return best


def cross_attention_layer_forward(memory, clip_context, params, num_heads, *,
                                  eps=1e-5, use_bf16=True, activation="relu",
                                  return_weights=True, block_batch=None):
  """memory: (B, E_ftr, gcat_dim), clip_context: (B, P_ftr, gcat_dim)
  -> (out, weight, weight_2) if return_weights else out."""
  B, Lq, E = memory.shape
  Lkv = clip_context.shape[1]
  assert E % num_heads == 0
  assert Lq // 2 + Lkv // 2 == Lq, "cat(conv1(att_E), conv2(att_P)) must match memory's seq dim"

  Bt = block_batch if block_batch is not None else _choose_block_batch(B, Lq)
  assert B % Bt == 0

  # Big weight matrices travel as bf16 (halves DMA + VMEM); biases / LN params stay f32.
  big = (lambda w: w.astype(jnp.bfloat16)) if use_bf16 else (lambda w: w)
  pe, pp = params["att_E"], params["att_P"]
  weights = [
      big(pe["wq"]), pe["bq"], big(pe["wkv"]), pe["bkv"], big(pe["wo"]), pe["bo"],
      big(pp["wq"]), pp["bq"], big(pp["wkv"]), pp["bkv"], big(pp["wo"]), pp["bo"],
      params["norm_att_g"], params["norm_att_b"],
      big(params["conv1_w"]), params["conv1_b"], big(params["conv2_w"]), params["conv2_b"],
      big(params["lin1_w"]), params["lin1_b"], big(params["lin2_w"]), params["lin2_b"],
      params["norm_lin_g"], params["norm_lin_b"],
  ]

  def batch_spec(full_shape):             # (Bt, ...) block, one block per grid step
    blk = (Bt,) + tuple(full_shape[1:])
    nz = len(full_shape) - 1
    return pl.BlockSpec(blk, lambda i, _n=nz: (i,) + (0,) * _n)

  def weight_spec(w):                     # constant block index + single buffer
    nd = w.ndim
    return pl.BlockSpec(tuple(w.shape), lambda i, _n=nd: (0,) * _n,
                        pipeline_mode=pl.Buffered(1))

  in_specs = ([batch_spec(memory.shape), batch_spec(clip_context.shape)]
              + [weight_spec(w) for w in weights])

  out_shape = [jax.ShapeDtypeStruct((B, Lq, E), jnp.float32)]
  out_specs = [batch_spec((B, Lq, E))]
  if return_weights:
    out_shape += [jax.ShapeDtypeStruct((B, Lq, Lkv), jnp.float32),   # weight   (att_E)
                  jax.ShapeDtypeStruct((B, Lkv, Lq), jnp.float32)]   # weight_2 (att_P)
    out_specs += [batch_spec((B, Lq, Lkv)), batch_spec((B, Lkv, Lq))]

  # Explicit scoped-VMEM budget: single-buffered (bf16) weights + pipelined
  # activation/output blocks + headroom; capped <= 48 MiB for v7x's 64 MiB VMEM.
  weight_bytes = sum(int(w.size) * w.dtype.itemsize for w in weights)
  block_bytes = 4 * Bt * (2 * Lq * E + Lkv * E + 2 * Lq * Lkv)
  vmem_limit = int(min(max(weight_bytes + 4 * block_bytes + (16 << 20), 32 << 20),
                       48 << 20))

  kernel = functools.partial(_gcat_layer_kernel, num_heads=num_heads, eps=eps,
                             use_bf16=use_bf16, activation=activation,
                             return_weights=return_weights)

  result = pl.pallas_call(
      kernel,
      grid=(B // Bt,),
      in_specs=in_specs,
      out_specs=out_specs,
      out_shape=out_shape,
      compiler_params=pltpu.CompilerParams(
          dimension_semantics=("parallel",),
          vmem_limit_bytes=vmem_limit),
  )(memory, clip_context, *weights)

  if return_weights:
    return result[0], result[1], result[2]
  return result[0]


# ----------------------------------------------------------------------------
# Pure-JAX reference (for correctness verification)
# ----------------------------------------------------------------------------
def cross_attention_layer_reference(memory, clip_context, params, num_heads,
                                    eps=1e-5, activation="relu"):
  def ln(x, g, b):
    mu = x.mean(-1, keepdims=True)
    var = ((x - mu) ** 2).mean(-1, keepdims=True)
    return (x - mu) / jnp.sqrt(var + eps) * g + b

  def act(x):
    return jax.nn.gelu(x) if activation == "gelu" else jnp.maximum(x, 0.0)

  def mha(xq, xkv, p):
    B, Lq, E = xq.shape
    Lkv = xkv.shape[1]
    H, D = num_heads, E // num_heads
    q = xq @ p["wq"] + p["bq"]
    kv = xkv @ p["wkv"] + p["bkv"]
    k, v = kv[..., :E], kv[..., E:]
    qh = q.reshape(B, Lq, H, D).transpose(0, 2, 1, 3)
    kh = k.reshape(B, Lkv, H, D).transpose(0, 2, 1, 3)
    vh = v.reshape(B, Lkv, H, D).transpose(0, 2, 1, 3)
    s = jnp.einsum("bhqd,bhkd->bhqk", qh, kh) / math.sqrt(D)
    att = jax.nn.softmax(s, axis=-1)
    oh = jnp.einsum("bhqk,bhkd->bhqd", att, vh)
    o = oh.transpose(0, 2, 1, 3).reshape(B, Lq, E) @ p["wo"] + p["bo"]
    return o, att.mean(axis=1)

  att_e, w = mha(memory, clip_context, params["att_E"])
  att_e = ln(memory + att_e, params["norm_att_g"], params["norm_att_b"])
  att_e = act(jnp.einsum("oc,bcd->bod", params["conv1_w"], att_e) + params["conv1_b"])

  att_p, w2 = mha(clip_context, memory, params["att_P"])
  att_p = ln(clip_context + att_p, params["norm_att_g"], params["norm_att_b"])
  att_p = act(jnp.einsum("oc,bcd->bod", params["conv2_w"], att_p) + params["conv2_b"])

  gcat = memory * jnp.concatenate([att_e, att_p], axis=1)
  h = jnp.maximum(gcat @ params["lin1_w"] + params["lin1_b"], 0.0)
  y = h @ params["lin2_w"] + params["lin2_b"]
  out = ln(gcat + y, params["norm_lin_g"], params["norm_lin_b"])
  return out, w, w2


# ----------------------------------------------------------------------------
# Deterministic parameter init
# ----------------------------------------------------------------------------
def init_params(key, gcat_dim, e_ftr_dim, p_ftr_dim, ff_dim):
  E = gcat_dim

  def u(k, shape, fan_in):
    s = 1.0 / math.sqrt(fan_in)
    return jax.random.uniform(k, shape, jnp.float32, -s, s)

  ks = jax.random.split(key, 24)

  def mha_p(k0, k1, k2, k3, k4, k5):
    return {
        "wq": u(k0, (E, E), E), "bq": u(k1, (1, E), E),
        "wkv": u(k2, (E, 2 * E), E), "bkv": u(k3, (1, 2 * E), E),
        "wo": u(k4, (E, E), E), "bo": u(k5, (1, E), E),
    }

  return {
      "att_E": mha_p(*ks[0:6]),
      "att_P": mha_p(*ks[6:12]),
      "norm_att_g": jnp.ones((1, E), jnp.float32),
      "norm_att_b": jnp.zeros((1, E), jnp.float32),
      "conv1_w": u(ks[12], (e_ftr_dim // 2, e_ftr_dim), e_ftr_dim),
      "conv1_b": u(ks[13], (e_ftr_dim // 2, 1), e_ftr_dim),
      "conv2_w": u(ks[14], (p_ftr_dim // 2, p_ftr_dim), p_ftr_dim),
      "conv2_b": u(ks[15], (p_ftr_dim // 2, 1), p_ftr_dim),
      "lin1_w": u(ks[16], (E, ff_dim), E),
      "lin1_b": u(ks[17], (1, ff_dim), E),
      "lin2_w": u(ks[18], (ff_dim, E), ff_dim),
      "lin2_b": u(ks[19], (1, E), ff_dim),
      "norm_lin_g": jnp.ones((1, E), jnp.float32),
      "norm_lin_b": jnp.zeros((1, E), jnp.float32),
  }


# ----------------------------------------------------------------------------
if __name__ == "__main__":
  # Small stand-ins for the module defaults (gcat_dim=768, E_ftr=49, P_ftr=50, ff=512).
  B = 2
  GCAT_DIM = 32
  NHEAD = 4
  E_FTR = 16       # memory seq length == conv1 in-channels
  P_FTR = 17       # clip_context seq length == conv2 in-channels  (16//2 + 17//2 == 16)
  FF = 64

  key = jax.random.PRNGKey(0)
  k_mem, k_ctx, k_par = jax.random.split(key, 3)
  memory = jax.random.normal(k_mem, (B, E_FTR, GCAT_DIM), jnp.float32)
  clip_context = jax.random.normal(k_ctx, (B, P_FTR, GCAT_DIM), jnp.float32)
  params = init_params(k_par, GCAT_DIM, E_FTR, P_FTR, FF)

  # Performance path: bf16 weights / MXU operands, f32 accumulation + f32 elementwise.
  out, w, w2 = cross_attention_layer_forward(memory, clip_context, params, NHEAD,
                                             use_bf16=True)
  jax.block_until_ready((out, w, w2))
  assert out.shape == (B, E_FTR, GCAT_DIM)
  assert w.shape == (B, E_FTR, P_FTR)
  assert w2.shape == (B, P_FTR, E_FTR)

  # Correctness: f32-operand kernel vs pure-JAX reference (tolerances account for
  # MXU default precision + approx reciprocal), bf16 kernel vs reference (loose).
  out32, w32, w232 = cross_attention_layer_forward(memory, clip_context, params, NHEAD,
                                                   use_bf16=False)
  ref_out, ref_w, ref_w2 = cross_attention_layer_reference(memory, clip_context, params, NHEAD)
  jax.block_until_ready((out32, w32, w232, ref_out, ref_w, ref_w2))

  def maxdiff(a, b):
    return float(jnp.max(jnp.abs(a - b)))

  assert maxdiff(out32, ref_out) < 5e-2, ("out(f32)", maxdiff(out32, ref_out))
  assert maxdiff(w32, ref_w) < 2e-2, ("weight(f32)", maxdiff(w32, ref_w))
  assert maxdiff(w232, ref_w2) < 2e-2, ("weight_2(f32)", maxdiff(w232, ref_w2))
  assert maxdiff(out, ref_out) < 2e-1, ("out(bf16)", maxdiff(out, ref_out))
  assert maxdiff(w, ref_w) < 5e-2, ("weight(bf16)", maxdiff(w, ref_w))

  print("KERNEL_OK")
</pallas_src>

<mosaic_0001>
module attributes {stable_mosaic.version = 11 : i64} {
  func.func @_gcat_layer_kernel(%arg0: i32, %arg1: memref<1x16x32xf32, #tpu.memory_space<vmem>>, %arg2: memref<1x17x32xf32, #tpu.memory_space<vmem>>, %arg3: memref<32x32xbf16, #tpu.memory_space<vmem>>, %arg4: memref<1x32xf32, #tpu.memory_space<vmem>>, %arg5: memref<32x64xbf16, #tpu.memory_space<vmem>>, %arg6: memref<1x64xf32, #tpu.memory_space<vmem>>, %arg7: memref<32x32xbf16, #tpu.memory_space<vmem>>, %arg8: memref<1x32xf32, #tpu.memory_space<vmem>>, %arg9: memref<32x32xbf16, #tpu.memory_space<vmem>>, %arg10: memref<1x32xf32, #tpu.memory_space<vmem>>, %arg11: memref<32x64xbf16, #tpu.memory_space<vmem>>, %arg12: memref<1x64xf32, #tpu.memory_space<vmem>>, %arg13: memref<32x32xbf16, #tpu.memory_space<vmem>>, %arg14: memref<1x32xf32, #tpu.memory_space<vmem>>, %arg15: memref<1x32xf32, #tpu.memory_space<vmem>>, %arg16: memref<1x32xf32, #tpu.memory_space<vmem>>, %arg17: memref<8x16xbf16, #tpu.memory_space<vmem>>, %arg18: memref<8x1xf32, #tpu.memory_space<vmem>>, %arg19: memref<8x17xbf16, #tpu.memory_space<vmem>>, %arg20: memref<8x1xf32, #tpu.memory_space<vmem>>, %arg21: memref<32x64xbf16, #tpu.memory_space<vmem>>, %arg22: memref<1x64xf32, #tpu.memory_space<vmem>>, %arg23: memref<64x32xbf16, #tpu.memory_space<vmem>>, %arg24: memref<1x32xf32, #tpu.memory_space<vmem>>, %arg25: memref<1x32xf32, #tpu.memory_space<vmem>>, %arg26: memref<1x32xf32, #tpu.memory_space<vmem>>, %arg27: memref<1x16x32xf32, #tpu.memory_space<vmem>>, %arg28: memref<1x16x17xf32, #tpu.memory_space<vmem>>, %arg29: memref<1x17x16xf32, #tpu.memory_space<vmem>>) attributes {dimension_semantics = [#tpu.dimension_semantics<parallel>], iteration_bounds = array<i64: 2>, scalar_prefetch = 0 : i64, scratch_operands = 0 : i64, tpu.core_type = #tpu.core_type<tc>, window_params = [{transform_indices = @transform_0, window_bounds = array<i64: 1, 16, 32>}, {transform_indices = @transform_1, window_bounds = array<i64: 1, 17, 32>}, {pipeline_mode = #tpu.pipeline_mode<synchronous>, transform_indices = @transform_2, window_bounds = array<i64: 32, 32>}, {pipeline_mode = #tpu.pipeline_mode<synchronous>, transform_indices = @transform_3, window_bounds = array<i64: 1, 32>}, {pipeline_mode = #tpu.pipeline_mode<synchronous>, transform_indices = @transform_4, window_bounds = array<i64: 32, 64>}, {pipeline_mode = #tpu.pipeline_mode<synchronous>, transform_indices = @transform_5, window_bounds = array<i64: 1, 64>}, {pipeline_mode = #tpu.pipeline_mode<synchronous>, transform_indices = @transform_6, window_bounds = array<i64: 32, 32>}, {pipeline_mode = #tpu.pipeline_mode<synchronous>, transform_indices = @transform_7, window_bounds = array<i64: 1, 32>}, {pipeline_mode = #tpu.pipeline_mode<synchronous>, transform_indices = @transform_8, window_bounds = array<i64: 32, 32>}, {pipeline_mode = #tpu.pipeline_mode<synchronous>, transform_indices = @transform_9, window_bounds = array<i64: 1, 32>}, {pipeline_mode = #tpu.pipeline_mode<synchronous>, transform_indices = @transform_10, window_bounds = array<i64: 32, 64>}, {pipeline_mode = #tpu.pipeline_mode<synchronous>, transform_indices = @transform_11, window_bounds = array<i64: 1, 64>}, {pipeline_mode = #tpu.pipeline_mode<synchronous>, transform_indices = @transform_12, window_bounds = array<i64: 32, 32>}, {pipeline_mode = #tpu.pipeline_mode<synchronous>, transform_indices = @transform_13, window_bounds = array<i64: 1, 32>}, {pipeline_mode = #tpu.pipeline_mode<synchronous>, transform_indices = @transform_14, window_bounds = array<i64: 1, 32>}, {pipeline_mode = #tpu.pipeline_mode<synchronous>, transform_indices = @transform_15, window_bounds = array<i64: 1, 32>}, {pipeline_mode = #tpu.pipeline_mode<synchronous>, transform_indices = @transform_16, window_bounds = array<i64: 8, 16>}, {pipeline_mode = #tpu.pipeline_mode<synchronous>, transform_indices = @transform_17, window_bounds = array<i64: 8, 1>}, {pipeline_mode = #tpu.pipeline_mode<synchronous>, transform_indices = @transform_18, window_bounds = array<i64: 8, 17>}, {pipeline_mode = #tpu.pipeline_mode<synchronous>, transform_indices = @transform_19, window_bounds = array<i64: 8, 1>}, {pipeline_mode = #tpu.pipeline_mode<synchronous>, transform_indices = @transform_20, window_bounds = array<i64: 32, 64>}, {pipeline_mode = #tpu.pipeline_mode<synchronous>, transform_indices = @transform_21, window_bounds = array<i64: 1, 64>}, {pipeline_mode = #tpu.pipeline_mode<synchronous>, transform_indices = @transform_22, window_bounds = array<i64: 64, 32>}, {pipeline_mode = #tpu.pipeline_mode<synchronous>, transform_indices = @transform_23, window_bounds = array<i64: 1, 32>}, {pipeline_mode = #tpu.pipeline_mode<synchronous>, transform_indices = @transform_24, window_bounds = array<i64: 1, 32>}, {pipeline_mode = #tpu.pipeline_mode<synchronous>, transform_indices = @transform_25, window_bounds = array<i64: 1, 32>}, {transform_indices = @transform_26, window_bounds = array<i64: 1, 16, 32>}, {transform_indices = @transform_27, window_bounds = array<i64: 1, 16, 17>}, {transform_indices = @transform_28, window_bounds = array<i64: 1, 17, 16>}]} {
    %c0 = arith.constant 0 : index
    %c0_0 = arith.constant 0 : index
    %c0_1 = arith.constant 0 : index
    %0 = vector.load %arg1[%c0, %c0_0, %c0_1] : memref<1x16x32xf32, #tpu.memory_space<vmem>>, vector<1x16x32xf32>
    %c0_2 = arith.constant 0 : index
    %c0_3 = arith.constant 0 : index
    %c0_4 = arith.constant 0 : index
    %1 = vector.load %arg2[%c0_2, %c0_3, %c0_4] : memref<1x17x32xf32, #tpu.memory_space<vmem>>, vector<1x17x32xf32>
    %2 = vector.shape_cast %0 : vector<1x16x32xf32> to vector<16x32xf32>
    %3 = vector.shape_cast %1 : vector<1x17x32xf32> to vector<17x32xf32>
    %c0_5 = arith.constant 0 : index
    %c0_6 = arith.constant 0 : index
    %4 = vector.load %arg3[%c0_5, %c0_6] : memref<32x32xbf16, #tpu.memory_space<vmem>>, vector<32x32xbf16>
    %c0_7 = arith.constant 0 : index
    %c0_8 = arith.constant 0 : index
    %5 = vector.load %arg4[%c0_7, %c0_8] : memref<1x32xf32, #tpu.memory_space<vmem>>, vector<1x32xf32>
    %c0_9 = arith.constant 0 : index
    %c0_10 = arith.constant 0 : index
    %6 = vector.load %arg5[%c0_9, %c0_10] : memref<32x64xbf16, #tpu.memory_space<vmem>>, vector<32x64xbf16>
    %c0_11 = arith.constant 0 : index
    %c0_12 = arith.constant 0 : index
    %7 = vector.load %arg6[%c0_11, %c0_12] : memref<1x64xf32, #tpu.memory_space<vmem>>, vector<1x64xf32>
    %c0_13 = arith.constant 0 : index
    %c0_14 = arith.constant 0 : index
    %8 = vector.load %arg7[%c0_13, %c0_14] : memref<32x32xbf16, #tpu.memory_space<vmem>>, vector<32x32xbf16>
    %c0_15 = arith.constant 0 : index
    %c0_16 = arith.constant 0 : index
    %9 = vector.load %arg8[%c0_15, %c0_16] : memref<1x32xf32, #tpu.memory_space<vmem>>, vector<1x32xf32>
    %10 = arith.truncf %2 : vector<16x32xf32> to vector<16x32xbf16>
    %cst = arith.constant dense<0.000000e+00> : vector<16x32xf32>
    %11 = tpu.matmul %10, %4, %cst {dimension_numbers = #tpu.dot_dimension_numbers<[1], [0], [0], [1], [0, 0, 1, 1], [], []>} : vector<16x32xbf16>, vector<32x32xbf16>, vector<16x32xf32> -> vector<16x32xf32>
    %12 = vector.broadcast %5 : vector<1x32xf32> to vector<16x32xf32>
    %13 = arith.addf %11, %12 : vector<16x32xf32>
    %14 = arith.truncf %3 : vector<17x32xf32> to vector<17x32xbf16>
    %cst_17 = arith.constant dense<0.000000e+00> : vector<17x64xf32>
    %15 = tpu.matmul %14, %6, %cst_17 {dimension_numbers = #tpu.dot_dimension_numbers<[1], [0], [0], [1], [0, 0, 1, 1], [], []>} : vector<17x32xbf16>, vector<32x64xbf16>, vector<17x64xf32> -> vector<17x64xf32>
    %16 = vector.broadcast %7 : vector<1x64xf32> to vector<17x64xf32>
    %17 = arith.addf %15, %16 : vector<17x64xf32>
    %18 = vector.shape_cast %13 : vector<16x32xf32> to vector<1x16x32xf32>
    %19 = vector.shape_cast %17 : vector<17x64xf32> to vector<1x17x64xf32>
    %cst_18 = arith.constant 0.000000e+00 : f32
    %20 = vector.broadcast %cst_18 : f32 to vector<1x16x17xf32>
    %21 = vector.extract_strided_slice %18 {offsets = [0, 0, 0], sizes = [1, 16, 8], strides = [1, 1, 1]} : vector<1x16x32xf32> to vector<1x16x8xf32>
    %22 = arith.truncf %21 : vector<1x16x8xf32> to vector<1x16x8xbf16>
    %23 = vector.extract_strided_slice %19 {offsets = [0, 0, 0], sizes = [1, 17, 8], strides = [1, 1, 1]} : vector<1x17x64xf32> to vector<1x17x8xf32>
    %24 = arith.truncf %23 : vector<1x17x8xf32> to vector<1x17x8xbf16>
    %25 = vector.extract_strided_slice %19 {offsets = [0, 0, 32], sizes = [1, 17, 8], strides = [1, 1, 1]} : vector<1x17x64xf32> to vector<1x17x8xf32>
    %26 = arith.truncf %25 : vector<1x17x8xf32> to vector<1x17x8xbf16>
    "tpu.trace_start"() <{level = 10 : i32, message = "bqd,bkd->bqk"}> : () -> ()
    %cst_19 = arith.constant dense<0.000000e+00> : vector<1x16x17xf32>
    %27 = tpu.matmul %22, %24, %cst_19 {dimension_numbers = #tpu.dot_dimension_numbers<[2], [2], [1], [1], [0, 0, 0, 1, 1, 1], [0], [0]>} : vector<1x16x8xbf16>, vector<1x17x8xbf16>, vector<1x16x17xf32> -> vector<1x16x17xf32>
    "tpu.trace_stop"() : () -> ()
    %cst_20 = arith.constant 0.353553385 : f32
    %28 = vector.broadcast %cst_20 : f32 to vector<1x16x17xf32>
    %29 = arith.mulf %27, %28 : vector<1x16x17xf32>
    %cst_21 = arith.constant dense<0xFF800000> : vector<1x16xf32>
    %30 = vector.multi_reduction <maximumf>, %29, %cst_21 [2] : vector<1x16x17xf32> to vector<1x16xf32>
    %31 = vector.shape_cast %30 : vector<1x16xf32> to vector<1x16x1xf32>
    %32 = vector.broadcast %31 : vector<1x16x1xf32> to vector<1x16x17xf32>
    %33 = arith.subf %29, %32 : vector<1x16x17xf32>
    %34 = math.exp %33 : vector<1x16x17xf32>
    %cst_22 = arith.constant dense<0.000000e+00> : vector<1x16xf32>
    %35 = vector.multi_reduction <add>, %34, %cst_22 [2] : vector<1x16x17xf32> to vector<1x16xf32>
    %36 = vector.shape_cast %35 : vector<1x16xf32> to vector<1x16x1xf32>
    %37 = tpu.reciprocal %36 {approx = true} : vector<1x16x1xf32> -> vector<1x16x1xf32>
    %38 = vector.broadcast %37 : vector<1x16x1xf32> to vector<1x16x17xf32>
    %39 = arith.mulf %34, %38 : vector<1x16x17xf32>
    %40 = arith.addf %20, %39 : vector<1x16x17xf32>
    %41 = arith.truncf %39 : vector<1x16x17xf32> to vector<1x16x17xbf16>
    "tpu.trace_start"() <{level = 10 : i32, message = "bqk,bkd->bqd"}> : () -> ()
    %cst_23 = arith.constant dense<0.000000e+00> : vector<1x16x8xf32>
    %42 = tpu.matmul %41, %26, %cst_23 {dimension_numbers = #tpu.dot_dimension_numbers<[2], [1], [1], [2], [0, 0, 0, 1, 1, 2], [0], [0]>} : vector<1x16x17xbf16>, vector<1x17x8xbf16>, vector<1x16x8xf32> -> vector<1x16x8xf32>
    "tpu.trace_stop"() : () -> ()
    %43 = vector.extract_strided_slice %18 {offsets = [0, 0, 8], sizes = [1, 16, 8], strides = [1, 1, 1]} : vector<1x16x32xf32> to vector<1x16x8xf32>
    %44 = arith.truncf %43 : vector<1x16x8xf32> to vector<1x16x8xbf16>
    %45 = vector.extract_strided_slice %19 {offsets = [0, 0, 8], sizes = [1, 17, 8], strides = [1, 1, 1]} : vector<1x17x64xf32> to vector<1x17x8xf32>
    %46 = arith.truncf %45 : vector<1x17x8xf32> to vector<1x17x8xbf16>
    %47 = vector.extract_strided_slice %19 {offsets = [0, 0, 40], sizes = [1, 17, 8], strides = [1, 1, 1]} : vector<1x17x64xf32> to vector<1x17x8xf32>
    %48 = arith.truncf %47 : vector<1x17x8xf32> to vector<1x17x8xbf16>
    "tpu.trace_start"() <{level = 10 : i32, message = "bqd,bkd->bqk"}> : () -> ()
    %cst_24 = arith.constant dense<0.000000e+00> : vector<1x16x17xf32>
    %49 = tpu.matmul %44, %46, %cst_24 {dimension_numbers = #tpu.dot_dimension_numbers<[2], [2], [1], [1], [0, 0, 0, 1, 1, 1], [0], [0]>} : vector<1x16x8xbf16>, vector<1x17x8xbf16>, vector<1x16x17xf32> -> vector<1x16x17xf32>
    "tpu.trace_stop"() : () -> ()
    %cst_25 = arith.constant 0.353553385 : f32
    %50 = vector.broadcast %cst_25 : f32 to vector<1x16x17xf32>
    %51 = arith.mulf %49, %50 : vector<1x16x17xf32>
    %cst_26 = arith.constant dense<0xFF800000> : vector<1x16xf32>
    %52 = vector.multi_reduction <maximumf>, %51, %cst_26 [2] : vector<1x16x17xf32> to vector<1x16xf32>
    %53 = vector.shape_cast %52 : vector<1x16xf32> to vector<1x16x1xf32>
    %54 = vector.broadcast %53 : vector<1x16x1xf32> to vector<1x16x17xf32>
    %55 = arith.subf %51, %54 : vector<1x16x17xf32>
    %56 = math.exp %55 : vector<1x16x17xf32>
    %cst_27 = arith.constant dense<0.000000e+00> : vector<1x16xf32>
    %57 = vector.multi_reduction <add>, %56, %cst_27 [2] : vector<1x16x17xf32> to vector<1x16xf32>
    %58 = vector.shape_cast %57 : vector<1x16xf32> to vector<1x16x1xf32>
    %59 = tpu.reciprocal %58 {approx = true} : vector<1x16x1xf32> -> vector<1x16x1xf32>
    %60 = vector.broadcast %59 : vector<1x16x1xf32> to vector<1x16x17xf32>
    %61 = arith.mulf %56, %60 : vector<1x16x17xf32>
    %62 = arith.addf %40, %61 : vector<1x16x17xf32>
    %63 = arith.truncf %61 : vector<1x16x17xf32> to vector<1x16x17xbf16>
    "tpu.trace_start"() <{level = 10 : i32, message = "bqk,bkd->bqd"}> : () -> ()
    %cst_28 = arith.constant dense<0.000000e+00> : vector<1x16x8xf32>
    %64 = tpu.matmul %63, %48, %cst_28 {dimension_numbers = #tpu.dot_dimension_numbers<[2], [1], [1], [2], [0, 0, 0, 1, 1, 2], [0], [0]>} : vector<1x16x17xbf16>, vector<1x17x8xbf16>, vector<1x16x8xf32> -> vector<1x16x8xf32>
    "tpu.trace_stop"() : () -> ()
    %65 = vector.extract_strided_slice %18 {offsets = [0, 0, 16], sizes = [1, 16, 8], strides = [1, 1, 1]} : vector<1x16x32xf32> to vector<1x16x8xf32>
    %66 = arith.truncf %65 : vector<1x16x8xf32> to vector<1x16x8xbf16>
    %67 = vector.extract_strided_slice %19 {offsets = [0, 0, 16], sizes = [1, 17, 8], strides = [1, 1, 1]} : vector<1x17x64xf32> to vector<1x17x8xf32>
    %68 = arith.truncf %67 : vector<1x17x8xf32> to vector<1x17x8xbf16>
    %69 = vector.extract_strided_slice %19 {offsets = [0, 0, 48], sizes = [1, 17, 8], strides = [1, 1, 1]} : vector<1x17x64xf32> to vector<1x17x8xf32>
    %70 = arith.truncf %69 : vector<1x17x8xf32> to vector<1x17x8xbf16>
    "tpu.trace_start"() <{level = 10 : i32, message = "bqd,bkd->bqk"}> : () -> ()
    %cst_29 = arith.constant dense<0.000000e+00> : vector<1x16x17xf32>
    %71 = tpu.matmul %66, %68, %cst_29 {dimension_numbers = #tpu.dot_dimension_numbers<[2], [2], [1], [1], [0, 0, 0, 1, 1, 1], [0], [0]>} : vector<1x16x8xbf16>, vector<1x17x8xbf16>, vector<1x16x17xf32> -> vector<1x16x17xf32>
    "tpu.trace_stop"() : () -> ()
    %cst_30 = arith.constant 0.353553385 : f32
    %72 = vector.broadcast %cst_30 : f32 to vector<1x16x17xf32>
    %73 = arith.mulf %71, %72 : vector<1x16x17xf32>
    %cst_31 = arith.constant dense<0xFF800000> : vector<1x16xf32>
    %74 = vector.multi_reduction <maximumf>, %73, %cst_31 [2] : vector<1x16x17xf32> to vector<1x16xf32>
    %75 = vector.shape_cast %74 : vector<1x16xf32> to vector<1x16x1xf32>
    %76 = vector.broadcast %75 : vector<1x16x1xf32> to vector<1x16x17xf32>
    %77 = arith.subf %73, %76 : vector<1x16x17xf32>
    %78 = math.exp %77 : vector<1x16x17xf32>
    %cst_32 = arith.constant dense<0.000000e+00> : vector<1x16xf32>
    %79 = vector.multi_reduction <add>, %78, %cst_32 [2] : vector<1x16x17xf32> to vector<1x16xf32>
    %80 = vector.shape_cast %79 : vector<1x16xf32> to vector<1x16x1xf32>
    %81 = tpu.reciprocal %80 {approx = true} : vector<1x16x1xf32> -> vector<1x16x1xf32>
    %82 = vector.broadcast %81 : vector<1x16x1xf32> to vector<1x16x17xf32>
    %83 = arith.mulf %78, %82 : vector<1x16x17xf32>
    %84 = arith.addf %62, %83 : vector<1x16x17xf32>
    %85 = arith.truncf %83 : vector<1x16x17xf32> to vector<1x16x17xbf16>
    "tpu.trace_start"() <{level = 10 : i32, message = "bqk,bkd->bqd"}> : () -> ()
    %cst_33 = arith.constant dense<0.000000e+00> : vector<1x16x8xf32>
    %86 = tpu.matmul %85, %70, %cst_33 {dimension_numbers = #tpu.dot_dimension_numbers<[2], [1], [1], [2], [0, 0, 0, 1, 1, 2], [0], [0]>} : vector<1x16x17xbf16>, vector<1x17x8xbf16>, vector<1x16x8xf32> -> vector<1x16x8xf32>
    "tpu.trace_stop"() : () -> ()
    %87 = vector.extract_strided_slice %18 {offsets = [0, 0, 24], sizes = [1, 16, 8], strides = [1, 1, 1]} : vector<1x16x32xf32> to vector<1x16x8xf32>
    %88 = arith.truncf %87 : vector<1x16x8xf32> to vector<1x16x8xbf16>
    %89 = vector.extract_strided_slice %19 {offsets = [0, 0, 24], sizes = [1, 17, 8], strides = [1, 1, 1]} : vector<1x17x64xf32> to vector<1x17x8xf32>
    %90 = arith.truncf %89 : vector<1x17x8xf32> to vector<1x17x8xbf16>
    %91 = vector.extract_strided_slice %19 {offsets = [0, 0, 56], sizes = [1, 17, 8], strides = [1, 1, 1]} : vector<1x17x64xf32> to vector<1x17x8xf32>
    %92 = arith.truncf %91 : vector<1x17x8xf32> to vector<1x17x8xbf16>
    "tpu.trace_start"() <{level = 10 : i32, message = "bqd,bkd->bqk"}> : () -> ()
    %cst_34 = arith.constant dense<0.000000e+00> : vector<1x16x17xf32>
    %93 = tpu.matmul %88, %90, %cst_34 {dimension_numbers = #tpu.dot_dimension_numbers<[2], [2], [1], [1], [0, 0, 0, 1, 1, 1], [0], [0]>} : vector<1x16x8xbf16>, vector<1x17x8xbf16>, vector<1x16x17xf32> -> vector<1x16x17xf32>
    "tpu.trace_stop"() : () -> ()
    %cst_35 = arith.constant 0.353553385 : f32
    %94 = vector.broadcast %cst_35 : f32 to vector<1x16x17xf32>
    %95 = arith.mulf %93, %94 : vector<1x16x17xf32>
    %cst_36 = arith.constant dense<0xFF800000> : vector<1x16xf32>
    %96 = vector.multi_reduction <maximumf>, %95, %cst_36 [2] : vector<1x16x17xf32> to vector<1x16xf32>
    %97 = vector.shape_cast %96 : vector<1x16xf32> to vector<1x16x1xf32>
    %98 = vector.broadcast %97 : vector<1x16x1xf32> to vector<1x16x17xf32>
    %99 = arith.subf %95, %98 : vector<1x16x17xf32>
    %100 = math.exp %99 : vector<1x16x17xf32>
    %cst_37 = arith.constant dense<0.000000e+00> : vector<1x16xf32>
    %101 = vector.multi_reduction <add>, %100, %cst_37 [2] : vector<1x16x17xf32> to vector<1x16xf32>
    %102 = vector.shape_cast %101 : vector<1x16xf32> to vector<1x16x1xf32>
    %103 = tpu.reciprocal %102 {approx = true} : vector<1x16x1xf32> -> vector<1x16x1xf32>
    %104 = vector.broadcast %103 : vector<1x16x1xf32> to vector<1x16x17xf32>
    %105 = arith.mulf %100, %104 : vector<1x16x17xf32>
    %106 = arith.addf %84, %105 : vector<1x16x17xf32>
    %107 = arith.truncf %105 : vector<1x16x17xf32> to vector<1x16x17xbf16>
    "tpu.trace_start"() <{level = 10 : i32, message = "bqk,bkd->bqd"}> : () -> ()
    %cst_38 = arith.constant dense<0.000000e+00> : vector<1x16x8xf32>
    %108 = tpu.matmul %107, %92, %cst_38 {dimension_numbers = #tpu.dot_dimension_numbers<[2], [1], [1], [2], [0, 0, 0, 1, 1, 2], [0], [0]>} : vector<1x16x17xbf16>, vector<1x17x8xbf16>, vector<1x16x8xf32> -> vector<1x16x8xf32>
    "tpu.trace_stop"() : () -> ()
    %109 = tpu.concatenate %42, %64, %86, %108 in 2 : vector<1x16x8xf32>, vector<1x16x8xf32>, vector<1x16x8xf32>, vector<1x16x8xf32> -> vector<1x16x32xf32>
    %110 = vector.shape_cast %109 : vector<1x16x32xf32> to vector<16x32xf32>
    %111 = arith.truncf %110 : vector<16x32xf32> to vector<16x32xbf16>
    %cst_39 = arith.constant dense<0.000000e+00> : vector<16x32xf32>
    %112 = tpu.matmul %111, %8, %cst_39 {dimension_numbers = #tpu.dot_dimension_numbers<[1], [0], [0], [1], [0, 0, 1, 1], [], []>} : vector<16x32xbf16>, vector<32x32xbf16>, vector<16x32xf32> -> vector<16x32xf32>
    %113 = vector.broadcast %9 : vector<1x32xf32> to vector<16x32xf32>
    %114 = arith.addf %112, %113 : vector<16x32xf32>
    %cst_40 = arith.constant 2.500000e-01 : f32
    %115 = vector.broadcast %cst_40 : f32 to vector<1x16x17xf32>
    %116 = arith.mulf %106, %115 : vector<1x16x17xf32>
    %117 = arith.addf %2, %114 : vector<16x32xf32>
    %c0_41 = arith.constant 0 : index
    %c0_42 = arith.constant 0 : index
    %118 = vector.load %arg15[%c0_41, %c0_42] : memref<1x32xf32, #tpu.memory_space<vmem>>, vector<1x32xf32>
    %c0_43 = arith.constant 0 : index
    %c0_44 = arith.constant 0 : index
    %119 = vector.load %arg16[%c0_43, %c0_44] : memref<1x32xf32, #tpu.memory_space<vmem>>, vector<1x32xf32>
    %cst_45 = arith.constant dense<0.000000e+00> : vector<16xf32>
    %120 = vector.multi_reduction <add>, %117, %cst_45 [1] : vector<16x32xf32> to vector<16xf32>
    %121 = vector.shape_cast %120 : vector<16xf32> to vector<16x1xf32>
    %cst_46 = arith.constant 3.200000e+01 : f32
    %122 = vector.broadcast %cst_46 : f32 to vector<16x1xf32>
    %123 = arith.divf %121, %122 : vector<16x1xf32>
    %124 = vector.broadcast %123 : vector<16x1xf32> to vector<16x32xf32>
    %125 = arith.subf %117, %124 : vector<16x32xf32>
    %126 = arith.mulf %125, %125 : vector<16x32xf32>
    %cst_47 = arith.constant dense<0.000000e+00> : vector<16xf32>
    %127 = vector.multi_reduction <add>, %126, %cst_47 [1] : vector<16x32xf32> to vector<16xf32>
    %128 = vector.shape_cast %127 : vector<16xf32> to vector<16x1xf32>
    %cst_48 = arith.constant 3.200000e+01 : f32
    %129 = vector.broadcast %cst_48 : f32 to vector<16x1xf32>
    %130 = arith.divf %128, %129 : vector<16x1xf32>
    %131 = vector.broadcast %123 : vector<16x1xf32> to vector<16x32xf32>
    %132 = arith.subf %117, %131 : vector<16x32xf32>
    %cst_49 = arith.constant 9.99999974E-6 : f32
    %133 = vector.broadcast %cst_49 : f32 to vector<16x1xf32>
    %134 = arith.addf %130, %133 : vector<16x1xf32>
    %135 = math.rsqrt %134 : vector<16x1xf32>
    %136 = vector.broadcast %135 : vector<16x1xf32> to vector<16x32xf32>
    %137 = arith.mulf %132, %136 : vector<16x32xf32>
    %138 = vector.broadcast %118 : vector<1x32xf32> to vector<16x32xf32>
    %139 = arith.mulf %137, %138 : vector<16x32xf32>
    %140 = vector.broadcast %119 : vector<1x32xf32> to vector<16x32xf32>
    %141 = arith.addf %139, %140 : vector<16x32xf32>
    %c0_50 = arith.constant 0 : index
    %c0_51 = arith.constant 0 : index
    %142 = vector.load %arg9[%c0_50, %c0_51] : memref<32x32xbf16, #tpu.memory_space<vmem>>, vector<32x32xbf16>
    %c0_52 = arith.constant 0 : index
    %c0_53 = arith.constant 0 : index
    %143 = vector.load %arg10[%c0_52, %c0_53] : memref<1x32xf32, #tpu.memory_space<vmem>>, vector<1x32xf32>
    %c0_54 = arith.constant 0 : index
    %c0_55 = arith.constant 0 : index
    %144 = vector.load %arg11[%c0_54, %c0_55] : memref<32x64xbf16, #tpu.memory_space<vmem>>, vector<32x64xbf16>
    %c0_56 = arith.constant 0 : index
    %c0_57 = arith.constant 0 : index
    %145 = vector.load %arg12[%c0_56, %c0_57] : memref<1x64xf32, #tpu.memory_space<vmem>>, vector<1x64xf32>
    %c0_58 = arith.constant 0 : index
    %c0_59 = arith.constant 0 : index
    %146 = vector.load %arg13[%c0_58, %c0_59] : memref<32x32xbf16, #tpu.memory_space<vmem>>, vector<32x32xbf16>
    %c0_60 = arith.constant 0 : index
    %c0_61 = arith.constant 0 : index
    %147 = vector.load %arg14[%c0_60, %c0_61] : memref<1x32xf32, #tpu.memory_space<vmem>>, vector<1x32xf32>
    %148 = arith.truncf %3 : vector<17x32xf32> to vector<17x32xbf16>
    %cst_62 = arith.constant dense<0.000000e+00> : vector<17x32xf32>
    %149 = tpu.matmul %148, %142, %cst_62 {dimension_numbers = #tpu.dot_dimension_numbers<[1], [0], [0], [1], [0, 0, 1, 1], [], []>} : vector<17x32xbf16>, vector<32x32xbf16>, vector<17x32xf32> -> vector<17x32xf32>
    %150 = vector.broadcast %143 : vector<1x32xf32> to vector<17x32xf32>
    %151 = arith.addf %149, %150 : vector<17x32xf32>
    %152 = arith.truncf %2 : vector<16x32xf32> to vector<16x32xbf16>
    %cst_63 = arith.constant dense<0.000000e+00> : vector<16x64xf32>
    %153 = tpu.matmul %152, %144, %cst_63 {dimension_numbers = #tpu.dot_dimension_numbers<[1], [0], [0], [1], [0, 0, 1, 1], [], []>} : vector<16x32xbf16>, vector<32x64xbf16>, vector<16x64xf32> -> vector<16x64xf32>
    %154 = vector.broadcast %145 : vector<1x64xf32> to vector<16x64xf32>
    %155 = arith.addf %153, %154 : vector<16x64xf32>
    %156 = vector.shape_cast %151 : vector<17x32xf32> to vector<1x17x32xf32>
    %157 = vector.shape_cast %155 : vector<16x64xf32> to vector<1x16x64xf32>
    %cst_64 = arith.constant 0.000000e+00 : f32
    %158 = vector.broadcast %cst_64 : f32 to vector<1x17x16xf32>
    %159 = vector.extract_strided_slice %156 {offsets = [0, 0, 0], sizes = [1, 17, 8], strides = [1, 1, 1]} : vector<1x17x32xf32> to vector<1x17x8xf32>
    %160 = arith.truncf %159 : vector<1x17x8xf32> to vector<1x17x8xbf16>
    %161 = vector.extract_strided_slice %157 {offsets = [0, 0, 0], sizes = [1, 16, 8], strides = [1, 1, 1]} : vector<1x16x64xf32> to vector<1x16x8xf32>
    %162 = arith.truncf %161 : vector<1x16x8xf32> to vector<1x16x8xbf16>
    %163 = vector.extract_strided_slice %157 {offsets = [0, 0, 32], sizes = [1, 16, 8], strides = [1, 1, 1]} : vector<1x16x64xf32> to vector<1x16x8xf32>
    %164 = arith.truncf %163 : vector<1x16x8xf32> to vector<1x16x8xbf16>
    "tpu.trace_start"() <{level = 10 : i32, message = "bqd,bkd->bqk"}> : () -> ()
    %cst_65 = arith.constant dense<0.000000e+00> : vector<1x17x16xf32>
    %165 = tpu.matmul %160, %162, %cst_65 {dimension_numbers = #tpu.dot_dimension_numbers<[2], [2], [1], [1], [0, 0, 0, 1, 1, 1], [0], [0]>} : vector<1x17x8xbf16>, vector<1x16x8xbf16>, vector<1x17x16xf32> -> vector<1x17x16xf32>
    "tpu.trace_stop"() : () -> ()
    %cst_66 = arith.constant 0.353553385 : f32
    %166 = vector.broadcast %cst_66 : f32 to vector<1x17x16xf32>
    %167 = arith.mulf %165, %166 : vector<1x17x16xf32>
    %cst_67 = arith.constant dense<0xFF800000> : vector<1x17xf32>
    %168 = vector.multi_reduction <maximumf>, %167, %cst_67 [2] : vector<1x17x16xf32> to vector<1x17xf32>
    %169 = vector.shape_cast %168 : vector<1x17xf32> to vector<1x17x1xf32>
    %170 = vector.broadcast %169 : vector<1x17x1xf32> to vector<1x17x16xf32>
    %171 = arith.subf %167, %170 : vector<1x17x16xf32>
    %172 = math.exp %171 : vector<1x17x16xf32>
    %cst_68 = arith.constant dense<0.000000e+00> : vector<1x17xf32>
    %173 = vector.multi_reduction <add>, %172, %cst_68 [2] : vector<1x17x16xf32> to vector<1x17xf32>
    %174 = vector.shape_cast %173 : vector<1x17xf32> to vector<1x17x1xf32>
    %175 = tpu.reciprocal %174 {approx = true} : vector<1x17x1xf32> -> vector<1x17x1xf32>
    %176 = vector.broadcast %175 : vector<1x17x1xf32> to vector<1x17x16xf32>
    %177 = arith.mulf %172, %176 : vector<1x17x16xf32>
    %178 = arith.addf %158, %177 : vector<1x17x16xf32>
    %179 = arith.truncf %177 : vector<1x17x16xf32> to vector<1x17x16xbf16>
    "tpu.trace_start"() <{level = 10 : i32, message = "bqk,bkd->bqd"}> : () -> ()
    %cst_69 = arith.constant dense<0.000000e+00> : vector<1x17x8xf32>
    %180 = tpu.matmul %179, %164, %cst_69 {dimension_numbers = #tpu.dot_dimension_numbers<[2], [1], [1], [2], [0, 0, 0, 1, 1, 2], [0], [0]>} : vector<1x17x16xbf16>, vector<1x16x8xbf16>, vector<1x17x8xf32> -> vector<1x17x8xf32>
    "tpu.trace_stop"() : () -> ()
    %181 = vector.extract_strided_slice %156 {offsets = [0, 0, 8], sizes = [1, 17, 8], strides = [1, 1, 1]} : vector<1x17x32xf32> to vector<1x17x8xf32>
    %182 = arith.truncf %181 : vector<1x17x8xf32> to vector<1x17x8xbf16>
    %183 = vector.extract_strided_slice %157 {offsets = [0, 0, 8], sizes = [1, 16, 8], strides = [1, 1, 1]} : vector<1x16x64xf32> to vector<1x16x8xf32>
    %184 = arith.truncf %183 : vector<1x16x8xf32> to vector<1x16x8xbf16>
    %185 = vector.extract_strided_slice %157 {offsets = [0, 0, 40], sizes = [1, 16, 8], strides = [1, 1, 1]} : vector<1x16x64xf32> to vector<1x16x8xf32>
    %186 = arith.truncf %185 : vector<1x16x8xf32> to vector<1x16x8xbf16>
    "tpu.trace_start"() <{level = 10 : i32, message = "bqd,bkd->bqk"}> : () -> ()
    %cst_70 = arith.constant dense<0.000000e+00> : vector<1x17x16xf32>
    %187 = tpu.matmul %182, %184, %cst_70 {dimension_numbers = #tpu.dot_dimension_numbers<[2], [2], [1], [1], [0, 0, 0, 1, 1, 1], [0], [0]>} : vector<1x17x8xbf16>, vector<1x16x8xbf16>, vector<1x17x16xf32> -> vector<1x17x16xf32>
    "tpu.trace_stop"() : () -> ()
    %cst_71 = arith.constant 0.353553385 : f32
    %188 = vector.broadcast %cst_71 : f32 to vector<1x17x16xf32>
    %189 = arith.mulf %187, %188 : vector<1x17x16xf32>
    %cst_72 = arith.constant dense<0xFF800000> : vector<1x17xf32>
    %190 = vector.multi_reduction <maximumf>, %189, %cst_72 [2] : vector<1x17x16xf32> to vector<1x17xf32>
    %191 = vector.shape_cast %190 : vector<1x17xf32> to vector<1x17x1xf32>
    %192 = vector.broadcast %191 : vector<1x17x1xf32> to vector<1x17x16xf32>
    %193 = arith.subf %189, %192 : vector<1x17x16xf32>
    %194 = math.exp %193 : vector<1x17x16xf32>
    %cst_73 = arith.constant dense<0.000000e+00> : vector<1x17xf32>
    %195 = vector.multi_reduction <add>, %194, %cst_73 [2] : vector<1x17x16xf32> to vector<1x17xf32>
    %196 = vector.shape_cast %195 : vector<1x17xf32> to vector<1x17x1xf32>
    %197 = tpu.reciprocal %196 {approx = true} : vector<1x17x1xf32> -> vector<1x17x1xf32>
    %198 = vector.broadcast %197 : vector<1x17x1xf32> to vector<1x17x16xf32>
    %199 = arith.mulf %194, %198 : vector<1x17x16xf32>
    %200 = arith.addf %178, %199 : vector<1x17x16xf32>
    %201 = arith.truncf %199 : vector<1x17x16xf32> to vector<1x17x16xbf16>
    "tpu.trace_start"() <{level = 10 : i32, message = "bqk,bkd->bqd"}> : () -> ()
    %cst_74 = arith.constant dense<0.000000e+00> : vector<1x17x8xf32>
    %202 = tpu.matmul %201, %186, %cst_74 {dimension_numbers = #tpu.dot_dimension_numbers<[2], [1], [1], [2], [0, 0, 0, 1, 1, 2], [0], [0]>} : vector<1x17x16xbf16>, vector<1x16x8xbf16>, vector<1x17x8xf32> -> vector<1x17x8xf32>
    "tpu.trace_stop"() : () -> ()
    %203 = vector.extract_strided_slice %156 {offsets = [0, 0, 16], sizes = [1, 17, 8], strides = [1, 1, 1]} : vector<1x17x32xf32> to vector<1x17x8xf32>
    %204 = arith.truncf %203 : vector<1x17x8xf32> to vector<1x17x8xbf16>
    %205 = vector.extract_strided_slice %157 {offsets = [0, 0, 16], sizes = [1, 16, 8], strides = [1, 1, 1]} : vector<1x16x64xf32> to vector<1x16x8xf32>
    %206 = arith.truncf %205 : vector<1x16x8xf32> to vector<1x16x8xbf16>
    %207 = vector.extract_strided_slice %157 {offsets = [0, 0, 48], sizes = [1, 16, 8], strides = [1, 1, 1]} : vector<1x16x64xf32> to vector<1x16x8xf32>
    %208 = arith.truncf %207 : vector<1x16x8xf32> to vector<1x16x8xbf16>
    "tpu.trace_start"() <{level = 10 : i32, message = "bqd,bkd->bqk"}> : () -> ()
    %cst_75 = arith.constant dense<0.000000e+00> : vector<1x17x16xf32>
    %209 = tpu.matmul %204, %206, %cst_75 {dimension_numbers = #tpu.dot_dimension_numbers<[2], [2], [1], [1], [0, 0, 0, 1, 1, 1], [0], [0]>} : vector<1x17x8xbf16>, vector<1x16x8xbf16>, vector<1x17x16xf32> -> vector<1x17x16xf32>
    "tpu.trace_stop"() : () -> ()
    %cst_76 = arith.constant 0.353553385 : f32
    %210 = vector.broadcast %cst_76 : f32 to vector<1x17x16xf32>
    %211 = arith.mulf %209, %210 : vector<1x17x16xf32>
    %cst_77 = arith.constant dense<0xFF800000> : vector<1x17xf32>
    %212 = vector.multi_reduction <maximumf>, %211, %cst_77 [2] : vector<1x17x16xf32> to vector<1x17xf32>
    %213 = vector.shape_cast %212 : vector<1x17xf32> to vector<1x17x1xf32>
    %214 = vector.broadcast %213 : vector<1x17x1xf32> to vector<1x17x16xf32>
    %215 = arith.subf %211, %214 : vector<1x17x16xf32>
    %216 = math.exp %215 : vector<1x17x16xf32>
    %cst_78 = arith.constant dense<0.000000e+00> : vector<1x17xf32>
    %217 = vector.multi_reduction <add>, %216, %cst_78 [2] : vector<1x17x16xf32> to vector<1x17xf32>
    %218 = vector.shape_cast %217 : vector<1x17xf32> to vector<1x17x1xf32>
    %219 = tpu.reciprocal %218 {approx = true} : vector<1x17x1xf32> -> vector<1x17x1xf32>
    %220 = vector.broadcast %219 : vector<1x17x1xf32> to vector<1x17x16xf32>
    %221 = arith.mulf %216, %220 : vector<1x17x16xf32>
    %222 = arith.addf %200, %221 : vector<1x17x16xf32>
    %223 = arith.truncf %221 : vector<1x17x16xf32> to vector<1x17x16xbf16>
    "tpu.trace_start"() <{level = 10 : i32, message = "bqk,bkd->bqd"}> : () -> ()
    %cst_79 = arith.constant dense<0.000000e+00> : vector<1x17x8xf32>
    %224 = tpu.matmul %223, %208, %cst_79 {dimension_numbers = #tpu.dot_dimension_numbers<[2], [1], [1], [2], [0, 0, 0, 1, 1, 2], [0], [0]>} : vector<1x17x16xbf16>, vector<1x16x8xbf16>, vector<1x17x8xf32> -> vector<1x17x8xf32>
    "tpu.trace_stop"() : () -> ()
    %225 = vector.extract_strided_slice %156 {offsets = [0, 0, 24], sizes = [1, 17, 8], strides = [1, 1, 1]} : vector<1x17x32xf32> to vector<1x17x8xf32>
    %226 = arith.truncf %225 : vector<1x17x8xf32> to vector<1x17x8xbf16>
    %227 = vector.extract_strided_slice %157 {offsets = [0, 0, 24], sizes = [1, 16, 8], strides = [1, 1, 1]} : vector<1x16x64xf32> to vector<1x16x8xf32>
    %228 = arith.truncf %227 : vector<1x16x8xf32> to vector<1x16x8xbf16>
    %229 = vector.extract_strided_slice %157 {offsets = [0, 0, 56], sizes = [1, 16, 8], strides = [1, 1, 1]} : vector<1x16x64xf32> to vector<1x16x8xf32>
    %230 = arith.truncf %229 : vector<1x16x8xf32> to vector<1x16x8xbf16>
    "tpu.trace_start"() <{level = 10 : i32, message = "bqd,bkd->bqk"}> : () -> ()
    %cst_80 = arith.constant dense<0.000000e+00> : vector<1x17x16xf32>
    %231 = tpu.matmul %226, %228, %cst_80 {dimension_numbers = #tpu.dot_dimension_numbers<[2], [2], [1], [1], [0, 0, 0, 1, 1, 1], [0], [0]>} : vector<1x17x8xbf16>, vector<1x16x8xbf16>, vector<1x17x16xf32> -> vector<1x17x16xf32>
    "tpu.trace_stop"() : () -> ()
    %cst_81 = arith.constant 0.353553385 : f32
    %232 = vector.broadcast %cst_81 : f32 to vector<1x17x16xf32>
    %233 = arith.mulf %231, %232 : vector<1x17x16xf32>
    %cst_82 = arith.constant dense<0xFF800000> : vector<1x17xf32>
    %234 = vector.multi_reduction <maximumf>, %233, %cst_82 [2] : vector<1x17x16xf32> to vector<1x17xf32>
    %235 = vector.shape_cast %234 : vector<1x17xf32> to vector<1x17x1xf32>
    %236 = vector.broadcast %235 : vector<1x17x1xf32> to vector<1x17x16xf32>
    %237 = arith.subf %233, %236 : vector<1x17x16xf32>
    %238 = math.exp %237 : vector<1x17x16xf32>
    %cst_83 = arith.constant dense<0.000000e+00> : vector<1x17xf32>
    %239 = vector.multi_reduction <add>, %238, %cst_83 [2] : vector<1x17x16xf32> to vector<1x17xf32>
    %240 = vector.shape_cast %239 : vector<1x17xf32> to vector<1x17x1xf32>
    %241 = tpu.reciprocal %240 {approx = true} : vector<1x17x1xf32> -> vector<1x17x1xf32>
    %242 = vector.broadcast %241 : vector<1x17x1xf32> to vector<1x17x16xf32>
    %243 = arith.mulf %238, %242 : vector<1x17x16xf32>
    %244 = arith.addf %222, %243 : vector<1x17x16xf32>
    %245 = arith.truncf %243 : vector<1x17x16xf32> to vector<1x17x16xbf16>
    "tpu.trace_start"() <{level = 10 : i32, message = "bqk,bkd->bqd"}> : () -> ()
    %cst_84 = arith.constant dense<0.000000e+00> : vector<1x17x8xf32>
    %246 = tpu.matmul %245, %230, %cst_84 {dimension_numbers = #tpu.dot_dimension_numbers<[2], [1], [1], [2], [0, 0, 0, 1, 1, 2], [0], [0]>} : vector<1x17x16xbf16>, vector<1x16x8xbf16>, vector<1x17x8xf32> -> vector<1x17x8xf32>
    "tpu.trace_stop"() : () -> ()
    %247 = tpu.concatenate %180, %202, %224, %246 in 2 : vector<1x17x8xf32>, vector<1x17x8xf32>, vector<1x17x8xf32>, vector<1x17x8xf32> -> vector<1x17x32xf32>
    %248 = vector.shape_cast %247 : vector<1x17x32xf32> to vector<17x32xf32>
    %249 = arith.truncf %248 : vector<17x32xf32> to vector<17x32xbf16>
    %cst_85 = arith.constant dense<0.000000e+00> : vector<17x32xf32>
    %250 = tpu.matmul %249, %146, %cst_85 {dimension_numbers = #tpu.dot_dimension_numbers<[1], [0], [0], [1], [0, 0, 1, 1], [], []>} : vector<17x32xbf16>, vector<32x32xbf16>, vector<17x32xf32> -> vector<17x32xf32>
    %251 = vector.broadcast %147 : vector<1x32xf32> to vector<17x32xf32>
    %252 = arith.addf %250, %251 : vector<17x32xf32>
    %cst_86 = arith.constant 2.500000e-01 : f32
    %253 = vector.broadcast %cst_86 : f32 to vector<1x17x16xf32>
    %254 = arith.mulf %244, %253 : vector<1x17x16xf32>
    %255 = arith.addf %3, %252 : vector<17x32xf32>
    %c0_87 = arith.constant 0 : index
    %c0_88 = arith.constant 0 : index
    %256 = vector.load %arg15[%c0_87, %c0_88] : memref<1x32xf32, #tpu.memory_space<vmem>>, vector<1x32xf32>
    %c0_89 = arith.constant 0 : index
    %c0_90 = arith.constant 0 : index
    %257 = vector.load %arg16[%c0_89, %c0_90] : memref<1x32xf32, #tpu.memory_space<vmem>>, vector<1x32xf32>
    %cst_91 = arith.constant dense<0.000000e+00> : vector<17xf32>
    %258 = vector.multi_reduction <add>, %255, %cst_91 [1] : vector<17x32xf32> to vector<17xf32>
    %259 = vector.shape_cast %258 : vector<17xf32> to vector<17x1xf32>
    %cst_92 = arith.constant 3.200000e+01 : f32
    %260 = vector.broadcast %cst_92 : f32 to vector<17x1xf32>
    %261 = arith.divf %259, %260 : vector<17x1xf32>
    %262 = vector.broadcast %261 : vector<17x1xf32> to vector<17x32xf32>
    %263 = arith.subf %255, %262 : vector<17x32xf32>
    %264 = arith.mulf %263, %263 : vector<17x32xf32>
    %cst_93 = arith.constant dense<0.000000e+00> : vector<17xf32>
    %265 = vector.multi_reduction <add>, %264, %cst_93 [1] : vector<17x32xf32> to vector<17xf32>
    %266 = vector.shape_cast %265 : vector<17xf32> to vector<17x1xf32>
    %cst_94 = arith.constant 3.200000e+01 : f32
    %267 = vector.broadcast %cst_94 : f32 to vector<17x1xf32>
    %268 = arith.divf %266, %267 : vector<17x1xf32>
    %269 = vector.broadcast %261 : vector<17x1xf32> to vector<17x32xf32>
    %270 = arith.subf %255, %269 : vector<17x32xf32>
    %cst_95 = arith.constant 9.99999974E-6 : f32
    %271 = vector.broadcast %cst_95 : f32 to vector<17x1xf32>
    %272 = arith.addf %268, %271 : vector<17x1xf32>
    %273 = math.rsqrt %272 : vector<17x1xf32>
    %274 = vector.broadcast %273 : vector<17x1xf32> to vector<17x32xf32>
    %275 = arith.mulf %270, %274 : vector<17x32xf32>
    %276 = vector.broadcast %256 : vector<1x32xf32> to vector<17x32xf32>
    %277 = arith.mulf %275, %276 : vector<17x32xf32>
    %278 = vector.broadcast %257 : vector<1x32xf32> to vector<17x32xf32>
    %279 = arith.addf %277, %278 : vector<17x32xf32>
    %280 = vector.shape_cast %141 : vector<16x32xf32> to vector<1x16x32xf32>
    %281 = vector.shape_cast %279 : vector<17x32xf32> to vector<1x17x32xf32>
    %c0_96 = arith.constant 0 : index
    %c0_97 = arith.constant 0 : index
    %282 = vector.load %arg17[%c0_96, %c0_97] : memref<8x16xbf16, #tpu.memory_space<vmem>>, vector<8x16xbf16>
    %283 = vector.shape_cast %280 : vector<1x16x32xf32> to vector<16x32xf32>
    %284 = arith.truncf %283 : vector<16x32xf32> to vector<16x32xbf16>
    %cst_98 = arith.constant dense<0.000000e+00> : vector<8x32xf32>
    %285 = tpu.matmul %282, %284, %cst_98 {dimension_numbers = #tpu.dot_dimension_numbers<[1], [0], [0], [1], [0, 0, 1, 1], [], []>} : vector<8x16xbf16>, vector<16x32xbf16>, vector<8x32xf32> -> vector<8x32xf32>
    %c0_99 = arith.constant 0 : index
    %c0_100 = arith.constant 0 : index
    %286 = vector.load %arg18[%c0_99, %c0_100] : memref<8x1xf32, #tpu.memory_space<vmem>>, vector<8x1xf32>
    %287 = vector.broadcast %286 : vector<8x1xf32> to vector<8x32xf32>
    %288 = arith.addf %285, %287 : vector<8x32xf32>
    %cst_101 = arith.constant 0.000000e+00 : f32
    %289 = vector.broadcast %cst_101 : f32 to vector<8x32xf32>
    %290 = arith.maximumf %288, %289 : vector<8x32xf32>
    %c0_102 = arith.constant 0 : index
    %c0_103 = arith.constant 0 : index
    %291 = vector.load %arg19[%c0_102, %c0_103] : memref<8x17xbf16, #tpu.memory_space<vmem>>, vector<8x17xbf16>
    %292 = vector.shape_cast %281 : vector<1x17x32xf32> to vector<17x32xf32>
    %293 = arith.truncf %292 : vector<17x32xf32> to vector<17x32xbf16>
    %cst_104 = arith.constant dense<0.000000e+00> : vector<8x32xf32>
    %294 = tpu.matmul %291, %293, %cst_104 {dimension_numbers = #tpu.dot_dimension_numbers<[1], [0], [0], [1], [0, 0, 1, 1], [], []>} : vector<8x17xbf16>, vector<17x32xbf16>, vector<8x32xf32> -> vector<8x32xf32>
    %c0_105 = arith.constant 0 : index
    %c0_106 = arith.constant 0 : index
    %295 = vector.load %arg20[%c0_105, %c0_106] : memref<8x1xf32, #tpu.memory_space<vmem>>, vector<8x1xf32>
    %296 = vector.broadcast %295 : vector<8x1xf32> to vector<8x32xf32>
    %297 = arith.addf %294, %296 : vector<8x32xf32>
    %cst_107 = arith.constant 0.000000e+00 : f32
    %298 = vector.broadcast %cst_107 : f32 to vector<8x32xf32>
    %299 = arith.maximumf %297, %298 : vector<8x32xf32>
    %300 = vector.extract_strided_slice %0 {offsets = [0, 0, 0], sizes = [1, 8, 32], strides = [1, 1, 1]} : vector<1x16x32xf32> to vector<1x8x32xf32>
    %301 = vector.shape_cast %300 : vector<1x8x32xf32> to vector<8x32xf32>
    %302 = arith.mulf %301, %290 : vector<8x32xf32>
    %303 = vector.extract_strided_slice %0 {offsets = [0, 8, 0], sizes = [1, 8, 32], strides = [1, 1, 1]} : vector<1x16x32xf32> to vector<1x8x32xf32>
    %304 = vector.shape_cast %303 : vector<1x8x32xf32> to vector<8x32xf32>
    %305 = arith.mulf %304, %299 : vector<8x32xf32>
    %306 = tpu.concatenate %302, %305 in 0 : vector<8x32xf32>, vector<8x32xf32> -> vector<16x32xf32>
    %c0_108 = arith.constant 0 : index
    %c0_109 = arith.constant 0 : index
    %307 = vector.load %arg21[%c0_108, %c0_109] : memref<32x64xbf16, #tpu.memory_space<vmem>>, vector<32x64xbf16>
    %308 = arith.truncf %306 : vector<16x32xf32> to vector<16x32xbf16>
    %cst_110 = arith.constant dense<0.000000e+00> : vector<16x64xf32>
    %309 = tpu.matmul %308, %307, %cst_110 {dimension_numbers = #tpu.dot_dimension_numbers<[1], [0], [0], [1], [0, 0, 1, 1], [], []>} : vector<16x32xbf16>, vector<32x64xbf16>, vector<16x64xf32> -> vector<16x64xf32>
    %c0_111 = arith.constant 0 : index
    %c0_112 = arith.constant 0 : index
    %310 = vector.load %arg22[%c0_111, %c0_112] : memref<1x64xf32, #tpu.memory_space<vmem>>, vector<1x64xf32>
    %311 = vector.broadcast %310 : vector<1x64xf32> to vector<16x64xf32>
    %312 = arith.addf %309, %311 : vector<16x64xf32>
    %cst_113 = arith.constant 0.000000e+00 : f32
    %313 = vector.broadcast %cst_113 : f32 to vector<16x64xf32>
    %314 = arith.maximumf %312, %313 : vector<16x64xf32>
    %c0_114 = arith.constant 0 : index
    %c0_115 = arith.constant 0 : index
    %315 = vector.load %arg23[%c0_114, %c0_115] : memref<64x32xbf16, #tpu.memory_space<vmem>>, vector<64x32xbf16>
    %316 = arith.truncf %314 : vector<16x64xf32> to vector<16x64xbf16>
    %cst_116 = arith.constant dense<0.000000e+00> : vector<16x32xf32>
    %317 = tpu.matmul %316, %315, %cst_116 {dimension_numbers = #tpu.dot_dimension_numbers<[1], [0], [0], [1], [0, 0, 1, 1], [], []>} : vector<16x64xbf16>, vector<64x32xbf16>, vector<16x32xf32> -> vector<16x32xf32>
    %c0_117 = arith.constant 0 : index
    %c0_118 = arith.constant 0 : index
    %318 = vector.load %arg24[%c0_117, %c0_118] : memref<1x32xf32, #tpu.memory_space<vmem>>, vector<1x32xf32>
    %319 = vector.broadcast %318 : vector<1x32xf32> to vector<16x32xf32>
    %320 = arith.addf %317, %319 : vector<16x32xf32>
    %321 = arith.addf %306, %320 : vector<16x32xf32>
    %c0_119 = arith.constant 0 : index
    %c0_120 = arith.constant 0 : index
    %322 = vector.load %arg25[%c0_119, %c0_120] : memref<1x32xf32, #tpu.memory_space<vmem>>, vector<1x32xf32>
    %c0_121 = arith.constant 0 : index
    %c0_122 = arith.constant 0 : index
    %323 = vector.load %arg26[%c0_121, %c0_122] : memref<1x32xf32, #tpu.memory_space<vmem>>, vector<1x32xf32>
    %cst_123 = arith.constant dense<0.000000e+00> : vector<16xf32>
    %324 = vector.multi_reduction <add>, %321, %cst_123 [1] : vector<16x32xf32> to vector<16xf32>
    %325 = vector.shape_cast %324 : vector<16xf32> to vector<16x1xf32>
    %cst_124 = arith.constant 3.200000e+01 : f32
    %326 = vector.broadcast %cst_124 : f32 to vector<16x1xf32>
    %327 = arith.divf %325, %326 : vector<16x1xf32>
    %328 = vector.broadcast %327 : vector<16x1xf32> to vector<16x32xf32>
    %329 = arith.subf %321, %328 : vector<16x32xf32>
    %330 = arith.mulf %329, %329 : vector<16x32xf32>
    %cst_125 = arith.constant dense<0.000000e+00> : vector<16xf32>
    %331 = vector.multi_reduction <add>, %330, %cst_125 [1] : vector<16x32xf32> to vector<16xf32>
    %332 = vector.shape_cast %331 : vector<16xf32> to vector<16x1xf32>
    %cst_126 = arith.constant 3.200000e+01 : f32
    %333 = vector.broadcast %cst_126 : f32 to vector<16x1xf32>
    %334 = arith.divf %332, %333 : vector<16x1xf32>
    %335 = vector.broadcast %327 : vector<16x1xf32> to vector<16x32xf32>
    %336 = arith.subf %321, %335 : vector<16x32xf32>
    %cst_127 = arith.constant 9.99999974E-6 : f32
    %337 = vector.broadcast %cst_127 : f32 to vector<16x1xf32>
    %338 = arith.addf %334, %337 : vector<16x1xf32>
    %339 = math.rsqrt %338 : vector<16x1xf32>
    %340 = vector.broadcast %339 : vector<16x1xf32> to vector<16x32xf32>
    %341 = arith.mulf %336, %340 : vector<16x32xf32>
    %342 = vector.broadcast %322 : vector<1x32xf32> to vector<16x32xf32>
    %343 = arith.mulf %341, %342 : vector<16x32xf32>
    %344 = vector.broadcast %323 : vector<1x32xf32> to vector<16x32xf32>
    %345 = arith.addf %343, %344 : vector<16x32xf32>
    %346 = vector.shape_cast %345 : vector<16x32xf32> to vector<1x16x32xf32>
    %c0_128 = arith.constant 0 : index
    %c0_129 = arith.constant 0 : index
    %c0_130 = arith.constant 0 : index
    %347 = vector.load %arg27[%c0_128, %c0_129, %c0_130] : memref<1x16x32xf32, #tpu.memory_space<vmem>>, vector<1x16x32xf32>
    tpu.vector_store %arg27[%c0_128, %c0_129, %c0_130], %346 {strides = array<i32>} : memref<1x16x32xf32, #tpu.memory_space<vmem>>, vector<1x16x32xf32>,
    %c0_131 = arith.constant 0 : index
    %c0_132 = arith.constant 0 : index
    %c0_133 = arith.constant 0 : index
    %348 = vector.load %arg28[%c0_131, %c0_132, %c0_133] : memref<1x16x17xf32, #tpu.memory_space<vmem>>, vector<1x16x17xf32>
    tpu.vector_store %arg28[%c0_131, %c0_132, %c0_133], %116 {strides = array<i32>} : memref<1x16x17xf32, #tpu.memory_space<vmem>>, vector<1x16x17xf32>,
    %c0_134 = arith.constant 0 : index
    %c0_135 = arith.constant 0 : index
    %c0_136 = arith.constant 0 : index
    %349 = vector.load %arg29[%c0_134, %c0_135, %c0_136] : memref<1x17x16xf32, #tpu.memory_space<vmem>>, vector<1x17x16xf32>
    tpu.vector_store %arg29[%c0_134, %c0_135, %c0_136], %254 {strides = array<i32>} : memref<1x17x16xf32, #tpu.memory_space<vmem>>, vector<1x17x16xf32>,
    return
  }
  func.func @transform_0(%arg0: i32) -> (i32, i32, i32) {
    %c0_i32 = arith.constant 0 : i32
    %c0_i32_0 = arith.constant 0 : i32
    %c0_i32_1 = arith.constant 0 : i32
    return %arg0, %c0_i32, %c0_i32_0 : i32, i32, i32
  }
  func.func @transform_1(%arg0: i32) -> (i32, i32, i32) {
    %c0_i32 = arith.constant 0 : i32
    %c0_i32_0 = arith.constant 0 : i32
    %c0_i32_1 = arith.constant 0 : i32
    return %arg0, %c0_i32, %c0_i32_0 : i32, i32, i32
  }
  func.func @transform_2(%arg0: i32) -> (i32, i32) {
    %c0_i32 = arith.constant 0 : i32
    %c0_i32_0 = arith.constant 0 : i32
    %c0_i32_1 = arith.constant 0 : i32
    return %c0_i32, %c0_i32_0 : i32, i32
  }
  func.func @transform_3(%arg0: i32) -> (i32, i32) {
    %c0_i32 = arith.constant 0 : i32
    %c0_i32_0 = arith.constant 0 : i32
    %c0_i32_1 = arith.constant 0 : i32
    return %c0_i32, %c0_i32_0 : i32, i32
  }
  func.func @transform_4(%arg0: i32) -> (i32, i32) {
    %c0_i32 = arith.constant 0 : i32
    %c0_i32_0 = arith.constant 0 : i32
    %c0_i32_1 = arith.constant 0 : i32
    return %c0_i32, %c0_i32_0 : i32, i32
  }
  func.func @transform_5(%arg0: i32) -> (i32, i32) {
    %c0_i32 = arith.constant 0 : i32
    %c0_i32_0 = arith.constant 0 : i32
    %c0_i32_1 = arith.constant 0 : i32
    return %c0_i32, %c0_i32_0 : i32, i32
  }
  func.func @transform_6(%arg0: i32) -> (i32, i32) {
    %c0_i32 = arith.constant 0 : i32
    %c0_i32_0 = arith.constant 0 : i32
    %c0_i32_1 = arith.constant 0 : i32
    return %c0_i32, %c0_i32_0 : i32, i32
  }
  func.func @transform_7(%arg0: i32) -> (i32, i32) {
    %c0_i32 = arith.constant 0 : i32
    %c0_i32_0 = arith.constant 0 : i32
    %c0_i32_1 = arith.constant 0 : i32
    return %c0_i32, %c0_i32_0 : i32, i32
  }
  func.func @transform_8(%arg0: i32) -> (i32, i32) {
    %c0_i32 = arith.constant 0 : i32
    %c0_i32_0 = arith.constant 0 : i32
    %c0_i32_1 = arith.constant 0 : i32
    return %c0_i32, %c0_i32_0 : i32, i32
  }
  func.func @transform_9(%arg0: i32) -> (i32, i32) {
    %c0_i32 = arith.constant 0 : i32
    %c0_i32_0 = arith.constant 0 : i32
    %c0_i32_1 = arith.constant 0 : i32
    return %c0_i32, %c0_i32_0 : i32, i32
  }
  func.func @transform_10(%arg0: i32) -> (i32, i32) {
    %c0_i32 = arith.constant 0 : i32
    %c0_i32_0 = arith.constant 0 : i32
    %c0_i32_1 = arith.constant 0 : i32
    return %c0_i32, %c0_i32_0 : i32, i32
  }
  func.func @transform_11(%arg0: i32) -> (i32, i32) {
    %c0_i32 = arith.constant 0 : i32
    %c0_i32_0 = arith.constant 0 : i32
    %c0_i32_1 = arith.constant 0 : i32
    return %c0_i32, %c0_i32_0 : i32, i32
  }
  func.func @transform_12(%arg0: i32) -> (i32, i32) {
    %c0_i32 = arith.constant 0 : i32
    %c0_i32_0 = arith.constant 0 : i32
    %c0_i32_1 = arith.constant 0 : i32
    return %c0_i32, %c0_i32_0 : i32, i32
  }
  func.func @transform_13(%arg0: i32) -> (i32, i32) {
    %c0_i32 = arith.constant 0 : i32
    %c0_i32_0 = arith.constant 0 : i32
    %c0_i32_1 = arith.constant 0 : i32
    return %c0_i32, %c0_i32_0 : i32, i32
  }
  func.func @transform_14(%arg0: i32) -> (i32, i32) {
    %c0_i32 = arith.constant 0 : i32
    %c0_i32_0 = arith.constant 0 : i32
    %c0_i32_1 = arith.constant 0 : i32
    return %c0_i32, %c0_i32_0 : i32, i32
  }
  func.func @transform_15(%arg0: i32) -> (i32, i32) {
    %c0_i32 = arith.constant 0 : i32
    %c0_i32_0 = arith.constant 0 : i32
    %c0_i32_1 = arith.constant 0 : i32
    return %c0_i32, %c0_i32_0 : i32, i32
  }
  func.func @transform_16(%arg0: i32) -> (i32, i32) {
    %c0_i32 = arith.constant 0 : i32
    %c0_i32_0 = arith.constant 0 : i32
    %c0_i32_1 = arith.constant 0 : i32
    return %c0_i32, %c0_i32_0 : i32, i32
  }
  func.func @transform_17(%arg0: i32) -> (i32, i32) {
    %c0_i32 = arith.constant 0 : i32
    %c0_i32_0 = arith.constant 0 : i32
    %c0_i32_1 = arith.constant 0 : i32
    return %c0_i32, %c0_i32_0 : i32, i32
  }
  func.func @transform_18(%arg0: i32) -> (i32, i32) {
    %c0_i32 = arith.constant 0 : i32
    %c0_i32_0 = arith.constant 0 : i32
    %c0_i32_1 = arith.constant 0 : i32
    return %c0_i32, %c0_i32_0 : i32, i32
  }
  func.func @transform_19(%arg0: i32) -> (i32, i32) {
    %c0_i32 = arith.constant 0 : i32
    %c0_i32_0 = arith.constant 0 : i32
    %c0_i32_1 = arith.constant 0 : i32
    return %c0_i32, %c0_i32_0 : i32, i32
  }
  func.func @transform_20(%arg0: i32) -> (i32, i32) {
    %c0_i32 = arith.constant 0 : i32
    %c0_i32_0 = arith.constant 0 : i32
    %c0_i32_1 = arith.constant 0 : i32
    return %c0_i32, %c0_i32_0 : i32, i32
  }
  func.func @transform_21(%arg0: i32) -> (i32, i32) {
    %c0_i32 = arith.constant 0 : i32
    %c0_i32_0 = arith.constant 0 : i32
    %c0_i32_1 = arith.constant 0 : i32
    return %c0_i32, %c0_i32_0 : i32, i32
  }
  func.func @transform_22(%arg0: i32) -> (i32, i32) {
    %c0_i32 = arith.constant 0 : i32
    %c0_i32_0 = arith.constant 0 : i32
    %c0_i32_1 = arith.constant 0 : i32
    return %c0_i32, %c0_i32_0 : i32, i32
  }
  func.func @transform_23(%arg0: i32) -> (i32, i32) {
    %c0_i32 = arith.constant 0 : i32
    %c0_i32_0 = arith.constant 0 : i32
    %c0_i32_1 = arith.constant 0 : i32
    return %c0_i32, %c0_i32_0 : i32, i32
  }
  func.func @transform_24(%arg0: i32) -> (i32, i32) {
    %c0_i32 = arith.constant 0 : i32
    %c0_i32_0 = arith.constant 0 : i32
    %c0_i32_1 = arith.constant 0 : i32
    return %c0_i32, %c0_i32_0 : i32, i32
  }
  func.func @transform_25(%arg0: i32) -> (i32, i32) {
    %c0_i32 = arith.constant 0 : i32
    %c0_i32_0 = arith.constant 0 : i32
    %c0_i32_1 = arith.constant 0 : i32
    return %c0_i32, %c0_i32_0 : i32, i32
  }
  func.func @transform_26(%arg0: i32) -> (i32, i32, i32) {
    %c0_i32 = arith.constant 0 : i32
    %c0_i32_0 = arith.constant 0 : i32
    %c0_i32_1 = arith.constant 0 : i32
    return %arg0, %c0_i32, %c0_i32_0 : i32, i32, i32
  }
  func.func @transform_27(%arg0: i32) -> (i32, i32, i32) {
    %c0_i32 = arith.constant 0 : i32
    %c0_i32_0 = arith.constant 0 : i32
    %c0_i32_1 = arith.constant 0 : i32
    return %arg0, %c0_i32, %c0_i32_0 : i32, i32, i32
  }
  func.func @transform_28(%arg0: i32) -> (i32, i32, i32) {
    %c0_i32 = arith.constant 0 : i32
    %c0_i32_0 = arith.constant 0 : i32
    %c0_i32_1 = arith.constant 0 : i32
    return %arg0, %c0_i32, %c0_i32_0 : i32, i32, i32
  }
}

</mosaic_0001>

<bundles_post_ra>
// kernel: tpu_custom_call.1
= control target key start
LH: loop header
LB: loop body
LE: loop exit
PB: predicated region body
PF: predicated region fallthrough
CT: control target
= control target key end

     0   :  { %s4181_s0 = inlined_call_operand.vmem [shape: f32[2,16,32], index: 0, kind: input, shape index: {}]   ;;  %s4182_s1 = inlined_call_operand.vmem [shape: f32[2,17,32], index: 1, kind: input, shape index: {}]   ;;  %s4183_s2 = inlined_call_operand.vmem [shape: bf16[32,32], index: 2, kind: input, shape index: {}]   ;;  %s4184_s3 = inlined_call_operand.vmem [shape: f32[1,32], index: 3, kind: input, shape index: {}]   ;;  %s4185_s4 = inlined_call_operand.vmem [shape: bf16[32,64], index: 4, kind: input, shape index: {}]   ;;  %s4186_s5 = inlined_call_operand.vmem [shape: f32[1,64], index: 5, kind: input, shape index: {}]   ;;  %s4187_s6 = inlined_call_operand.vmem [shape: bf16[32,32], index: 6, kind: input, shape index: {}]   ;;  %s4188_s7 = inlined_call_operand.vmem [shape: f32[1,32], index: 7, kind: input, shape index: {}]   ;;  %s4189_s8 = inlined_call_operand.vmem [shape: bf16[32,32], index: 8, kind: input, shape index: {}]   ;;  %s4190_s9 = inlined_call_operand.vmem [shape: f32[1,32], index: 9, kind: input, shape index: {}]   ;;  %s4191_s10 = inlined_call_operand.hbm [shape: bf16[32,64], index: 10, kind: input, shape index: {}]   ;;  %s4192_s11 = inlined_call_operand.vmem [shape: f32[1,64], index: 11, kind: input, shape index: {}]   ;;  %s4193_s12 = inlined_call_operand.hbm [shape: bf16[32,32], index: 12, kind: input, shape index: {}]   ;;  %s4194_s13 = inlined_call_operand.vmem [shape: f32[1,32], index: 13, kind: input, shape index: {}]   ;;  %s4195_s14 = inlined_call_operand.vmem [shape: f32[1,32], index: 14, kind: input, shape index: {}]   ;;  %s4196_s15 = inlined_call_operand.hbm [shape: f32[1,32], index: 15, kind: input, shape index: {}]   ;;  %s4197_s16 = inlined_call_operand.vmem [shape: bf16[8,16], index: 16, kind: input, shape index: {}]   ;;  %s4198_s17 = inlined_call_operand.vmem [shape: f32[8,1], index: 17, kind: input, shape index: {}]   ;;  %s4199_s18 = inlined_call_operand.vmem [shape: bf16[8,17], index: 18, kind: input, shape index: {}]   ;;  %s4200_s19 = inlined_call_operand.vmem [shape: f32[8,1], index: 19, kind: input, shape index: {}]   ;;  %s4201_s20 = inlined_call_operand.hbm [shape: bf16[32,64], index: 20, kind: input, shape index: {}]   ;;  %s4202_s21 = inlined_call_operand.vmem [shape: f32[1,64], index: 21, kind: input, shape index: {}]   ;;  %s4203_s22 = inlined_call_operand.vmem [shape: bf16[64,32], index: 22, kind: input, shape index: {}]   ;;  %s4204_s23 = inlined_call_operand.vmem [shape: f32[1,32], index: 23, kind: input, shape index: {}]   ;;  %s4205_s24 = inlined_call_operand.vmem [shape: f32[1,32], index: 24, kind: input, shape index: {}]   ;;  %s4206_s25 = inlined_call_operand.vmem [shape: f32[1,32], index: 25, kind: input, shape index: {}]   ;;  %s4207_s26 = inlined_call_operand.hbm [shape: f32[2,16,32], index: 26, kind: output, shape index: {0}]   ;;  %s4208_s27 = inlined_call_operand.hbm [shape: f32[2,16,17], index: 27, kind: output, shape index: {1}]   ;;  %s4209_s28 = inlined_call_operand.vmem [shape: f32[2,17,16], index: 28, kind: output, shape index: {2}]  }
   0x1   :  { %4231 = sst [smem:[#allocation25_spill]] %s4181_s0 }
   0x2   :  { %4232 = sst [smem:[#allocation26_spill]] %s4182_s1 }
   0x3   :  { %4233 = sst [smem:[#allocation27_spill]] %s4183_s2 }
   0x4   :  { %4234 = sst [smem:[#allocation28_spill]] %s4184_s3 }
   0x5   :  { %4235 = sst [smem:[#allocation29_spill]] %s4185_s4 }
   0x6   :  { %4236 = sst [smem:[#allocation30_spill]] %s4186_s5 }
   0x7   :  { %4237 = sst [smem:[#allocation31_spill]] %s4187_s6 }
   0x8   :  { %4238 = sst [smem:[#allocation32_spill]] %s4188_s7 }
   0x9   :  { %4239 = sst [smem:[#allocation33_spill]] %s4189_s8 }
   0xa   :  { %4240 = sst [smem:[#allocation34_spill]] %s4190_s9 }
   0xb   :  { %4241 = sst [smem:[#allocation35_spill]] %s4191_s10 }
   0xc   :  { %4242 = sst [smem:[#allocation36_spill]] %s4192_s11 }
   0xd   :  { %4243 = sst [smem:[#allocation37_spill]] %s4193_s12 }
   0xe   :  { %4244 = sst [smem:[#allocation38_spill]] %s4194_s13 }
   0xf   :  { %4245 = sst [smem:[#allocation39_spill]] %s4195_s14 }
  0x10   :  { %4246 = sst [smem:[#allocation40_spill]] %s4196_s15 }
  0x11   :  { %4247 = sst [smem:[#allocation41_spill]] %s4205_s24 }
  0x12   :  { %4248 = sst [smem:[#allocation42_spill]] %s4206_s25 }
  0x13   :  { %4249 = sst [smem:[#allocation43_spill]] %s4207_s26 }
  0x14   :  { %4250 = sst [smem:[#allocation44_spill]] %s4208_s27 }
  0x15   :  { %34 = vsyncpa [#allocation3], 0 }
  0x16   :  { %35 = vsyncpa [#allocation6], 0 }
  0x17   :  { %36 = vsyncpa [#allocation9], 0 }
  0x18   :  { %37 = vsyncpa [#allocation4], 0 }
  0x19   :  { %39 = vsyncpa [#allocation4 + $0x1], 0 }
  0x1a   :  { %40 = vsyncpa [#allocation12], 0 }
  0x1b   :  { %42 = vsyncpa [#allocation12 + $0x1], 0  ;;  %s3479_s8 = smov 0   ;;  %s3481_s5 = smov 0  }
  0x1c   :  { %s3483_s9 = smov 0   ;;  %s3485_s30 = smov 0  }
  0x1d LB: > { %4251 = sst [smem:[#allocation18_spill]] %s3301_s8  ;;  %s3500_s3 = sadd.s32 4294967295, %s3313_s30   ;;  %s3313_s30 = sphi %s3485_s30, %s4291_s30   ;;  %s3309_s9 = sphi %s3483_s9, %s4293_s9   ;;  %s3305_s5 = sphi %s3481_s5, %s4295_s5   ;;  %s3301_s8 = sphi %s3479_s8, %s4294_s8  }
  0x1e   : > { %4252 = sst [smem:[#allocation19_spill]] %s3309_s9  ;;  %s2683_s6 = sadd.s32 4294967294, %s3313_s30  }
  0x1f   : > { %4253 = sst [smem:[#allocation20_spill]] %s3313_s30  ;;  %s3504_s10 = sadd.s32 1, %s3313_s30  }
  0x20   : > { %4254 = sst [smem:[#allocation21_spill]] %s3504_s10  ;;  %s611_s0 = sadd.s32 1, %s3309_s9 }
  0x21   : > { %s608_s11 = ssub.s32 %s3313_s30, %s3504_s10  ;;  %p621_p0 = scmp.ne.s32.totalorder %s3309_s9, %s3305_s5 }
  0x22   : > { %p609_p1 = scmp.eq.s32.totalorder %s608_s11, 0  ;;  %p622_p2 = scmp.eq.s32.totalorder %s3500_s3, 1 }
  0x23   : > { %p627_p3 = scmp.ne.s32.totalorder %s3305_s5, %s3301_s8  ;;  %p628_p4 = scmp.eq.s32.totalorder %s2683_s6, 1 }
  0x24   : > { %s3515_s29 = scalar_select %p609_p1, %s3309_s9, %s611_s0  }
  0x25   : > { %p3517_p5 = por %p622_p2, %p621_p0  ;;  %p3521_p6 = por %p628_p4, %p627_p3 }
  0x26   : > { %4255 = sst [smem:[#allocation22_spill]] %s3515_s29  ;;  %p2684_p7 = scmp.ge.s32.totalorder %s3313_s30, 1 }
  0x27   : > { %s4256_s2 = scalar_select %p3517_p5, 1, 0 }
  0x28   : > { %s4258_s7 = scalar_select %p3521_p6, 1, 0 }
  0x29   : > { %4257 = sst [smem:[#allocation23_spill]] %s4256_s2  ;;  %p687_p8 = scmp.lt.s32.totalorder %s3313_s30, 3 }
  0x2a   : > { %4259 = sst [smem:[#allocation24_spill]] %s4258_s7  ;;  %p2880_p9 = scmp.eq.s32.totalorder %s3500_s3, 0 }
  0x2b   : > { %p3528_p10 = pnand %p2684_p7, %p687_p8  ;;  %s4261_s6 = sld [smem:[#allocation37_spill]] }
  0x2c   : > { %s4262_s9 = sld [smem:[#allocation35_spill]]  ;;  %s3315_s8 = smov [#allocation5]  }
  0x2d   : > { %p2860_p11 = pneg %p3528_p10  ;;  %s741_s30 = sshll.u32 %s3315_s8, 4  ;;  %s742_s30 = int_to_ptr.vmem [resolvable:$true] %s741_s30 }
  0x2e   : > { %s3316_s1 = smov 64   ;;  %s3317_s4 = smov 4  }
  0x2f   : > { %p3542_p12 = pnand %p2880_p9, %p2860_p11  ;;  %s4264_s15 = sld [smem:[#allocation40_spill]] }
  0x30   : > { %s783_s24 = sshll.u32 %s4201_s20, 4  ;;  %s3319_s27 = smov [#allocation7]   ;;  %s784_s24 = int_to_ptr.hbm [resolvable:$true] %s783_s24 }
  0x31   : > { %s739_s0 = sshll.u32 %s4261_s6, 4  ;;  %s3318_s6 = smov [#allocation2]   ;;  %s740_s0 = int_to_ptr.hbm [resolvable:$true] %s739_s0 }
  0x32   : > { %s722_s10 = sshll.u32 %s4262_s9, 4  ;;  %s724_s29 = sshll.u32 %s3318_s6, 4  ;;  %s723_s10 = int_to_ptr.hbm [resolvable:$true] %s722_s10  ;;  %s725_s29 = int_to_ptr.vmem [resolvable:$true] %s724_s29 }
  0x33   : > { %2866 = dma.hbm_to_vmem [thread:$0]  (!%p3542_p12), %s740_s0, 256, %s742_s30, [#allocation6], %s3316_s1, %s3316_s1, %s3317_s4  }
  0x34   : > { %2863 = dma.hbm_to_vmem [thread:$0]  (!%p3542_p12), %s723_s10, 256, %s725_s29, [#allocation3], %s3316_s1, %s3316_s1, %s3317_s4  }
  0x35   : > { %s760_s26 = sshll.u32 %s4264_s15, 4  ;;  %s762_s2 = sshll.u32 %s3319_s27, 4  ;;  %s761_s26 = int_to_ptr.hbm [resolvable:$true] %s760_s26  ;;  %s763_s2 = int_to_ptr.vmem [resolvable:$true] %s762_s2 }
  0x36   : > { %2869 = dma.hbm_to_vmem [thread:$0]  (!%p3542_p12), %s761_s26, 16, %s763_s2, [#allocation6]  }
  0x37   : > { %s3320_s30 = smov [#allocation8]   ;;  %832 = sbr.rel (%p3528_p10) target bundleno = 2927 (0xb6f), region = 124 }
  0x38   : > { %s785_s0 = sshll.u32 %s3320_s30, 4  ;;  %s786_s0 = int_to_ptr.vmem [resolvable:$true] %s785_s0 }
  0x39   : > { %2872 = dma.hbm_to_vmem [thread:$0]  (!%p3542_p12), %s784_s24, 256, %s786_s0, [#allocation9], %s3316_s1, %s3316_s1, %s3317_s4  }
  0x3c   : > { %3280 = dma.done.wait (%p2880_p9), [#allocation3], 256  }
  0x3d   : > { %3282 = vsyncadd (%p2880_p9), [#allocation3], 4294967040 }
  0x3e   : > { %3284 = dma.done.wait (%p2880_p9), [#allocation6], 272  }
  0x3f   : > { %3286 = vsyncadd (%p2880_p9), [#allocation6], 4294967024 }
  0x40   : > { %3288 = dma.done.wait (%p2880_p9), [#allocation9], 256  }
  0x41   : > { %3290 = vsyncadd (%p2880_p9), [#allocation9], 4294967040  ;;  %p937_p13 = scmp.lt.s32.totalorder %s3500_s3, 1  ;;  %s4265_s2 = sld [smem:[#allocation25_spill]]  ;;  %vm989_vm0 = vcmask 261120   ;;  %vm1066_vm1 = vcmask 64512  }
  0x42   : > { %s4266_s4 = sld [smem:[#allocation26_spill]]  ;;  %s3321_s30 = smov 120   ;;  %vm1092_vm2 = vcmask 138240   ;;  %vm1132_vm3 = vcmask 1040384   ;;  %vm1439_vm4 = vcmask 130048   ;;  %vm1676_vm5 = vcmask 122880  }
  0x43   : > { %s3576_s24 = scalar_select %p937_p13, %s3500_s3, 1  ;;  %vm1442_vm6 = vcmask 195584   ;;  %vm2175_vm8 = vcmask 253952  }
  0x44   : > { %s4267_s11 = sld [smem:[#allocation27_spill]]  ;;  %s3323_s27 = smov 104  }
  0x45   : > { %s2818_s25 = sshll.u32 %s3576_s24, 4  ;;  %s4224_s26 = smul.u32 24, %s3576_s24 }
  0x46   : > { %s4268_s0 = sld [smem:[#allocation29_spill]]  ;;  %s4225_s10 = smov 80  }
  0x47   : > { %s3583_s7 = scalar_lea.vmem %s4265_s2, %s2818_s25  ;;  %s4270_s8 = sld [smem:[#allocation30_spill]] }
  0x48   : > { %s3590_s6 = scalar_lea.vmem %s4266_s4, %s4224_s26  ;;  %v953_v4 = vld [vmem:[%s3583_s7] sm:$0xff]  ;;  %v954_v5 = vld [vmem:[%s3583_s7 + $0x8] sm:$0xff]  ;;  %s4269_s4 = sld [smem:[#allocation28_spill]] }
  0x49   : > { %v955_v6 = vld [vmem:[%s3590_s6] sm:$0xff]  ;;  %v956_v7 = vld [vmem:[%s3590_s6 + $0x8] sm:$0xff]  ;;  %v3608_v8 = vpack.c.bf16 %v954_v5, %v953_v4  ;;  %v957_v10 = vld [vmem:[%s3590_s6 + $0x10] sm:$0x1]  ;;  %s3322_s25 = smov 112   ;;  %s3325_s2 = smov 96  }
  0x4a   : > { %v2820_v0 = vld [vmem:[%s4267_s11 + $0x8] sm:$0xff]  ;;  %v2819_v2 = vld [vmem:[%s4267_s11] sm:$0xff]  ;;  %v3610_v9 = vpack.c.bf16 %v956_v7, %v955_v6  ;;  %v3617_v11 = vpack.c.bf16 %v957_v10, %v957_v10  ;;  %s3326_s12 = smov 88   ;;  %v3327_v5 = vmov 0   ;;  %s3328_s1 = smov 72  }
  0x4b   : > { %999 = vmatpush.bf16.msra.mxu0 %v2820_v0  ;;  %2971 = vset.pattern.permute.xlu1 %v3327_v5  ;;  %s4271_s9 = sld [smem:[#allocation33_spill]] }
  0x4c   : > { %v2822_v1 = vld [vmem:[%s4268_s0 + $0x8] sm:$0xff]  ;;  %v2821_v3 = vld [vmem:[%s4268_s0] sm:$0xff]  ;;  %2970 = vset.pattern.permute.xlu0 %v3327_v5  ;;  %s4273_s29 = sld [smem:[#allocation36_spill]] }
  0x4d   : > { %1036 = vmatpush.bf16.msra.mxu1 %v2822_v1  ;;  %v2973_v15 = vld [vmem:[%s4270_s8] ss:$0 sm:$0xff]  ;;  %s4279_s13 = sld [smem:[#allocation38_spill]] }
  0x4e   : > { %v2972_v12 = vld [vmem:[%s4269_s4] ss:$0 sm:$0xff]  ;;  %s3760_s4 = sand.u32 1, %s3305_s5   ;;  %s4280_s14 = sld [smem:[#allocation39_spill]] }
  0x4f   : > { %1000 = vmatpush.bf16.msra.mxu0 %v2819_v2 }
  0x51   : > { %1037 = vmatpush.bf16.msra.mxu1 %v2821_v3  ;;  %s4272_s26 = smov %s4271_s9 }
  0x52   : > { %2709 = vmatmul.msk.bf16.vlgmr.msra.gmra.mxu0 %vm989_vm0, %v3608_v8 }
  0x54   : > { %2718 = vmatmul.msk.bf16.vlgmr.msra.gmra.mxu1 %vm989_vm0, %v3610_v9 }
  0x64   : > { %2719 = vmatmul.msk.bf16.gmra.mxu1 %vm989_vm0, %v3617_v11 }
  0xcf   : > { %v1002_v13 = vpop.f32.mrf.mxu0 }
  0xd0   : > { %v1003_v16 = vadd.f32 %v2972_v12, %v1002_v13 }
  0xd1   : > { %v1039_v14 = vpop.f32.mrf.mxu1 }
  0xd2   : > { %v1040_v17 = vadd.f32 %v2973_v15, %v1039_v14  ;;  %v1048_v18 = vpack.c.bf16 %v1003_v16, %v1003_v16 }
  0xd4   : > { %v1050_v21 = vpack.c.bf16 %v1040_v17, %v1040_v17  ;;  %v1055_v24 = vunpack.c.l.b16 %v1048_v18  ;;  %v3678_v17 = vsel %vm1132_vm3, 65535, %v3327_v5 }
  0xd6   : > { %v1061_v27 = vunpack.c.l.b16 %v1050_v21 }
  0xd7   : > { %v1004_v19 = vpop.f32.mrf.mxu0 }
  0xd8   : > { %v1005_v22 = vadd.f32 %v2972_v12, %v1004_v19 }
  0xd9   : > { %v1041_v20 = vpop.f32.mrf.mxu1 }
  0xda   : > { %v1042_v23 = vadd.f32 %v2973_v15, %v1041_v20  ;;  %v1049_v25 = vpack.c.bf16 %v1005_v22, %v1005_v22 }
  0xdc   : > { %v1051_v26 = vpack.c.bf16 %v1042_v23, %v1042_v23  ;;  %v1056_v28 = vunpack.c.l.b16 %v1049_v25 }
  0xde   : > { %v1062_v29 = vunpack.c.l.b16 %v1051_v26  ;;  %v1057_v30 = vpack.c.b16 %v1056_v28, %v1055_v24 }
  0xe0   : > { %v3627_v31 = vpack.c.b16 %v1062_v29, %v1061_v27  ;;  %1239 = vrot.lane.b32.xlu1 %v1057_v30, %s3322_s25 }
  0xe1   : > { %v1044_v32 = vpop.f32.mrf.mxu1 }
  0xe2   : > { %v1045_v33 = vadd.f32 %v2973_v15, %v1044_v32  ;;  %1154 = vrot.lane.b32.xlu2 %v3627_v31, %s3321_s30  ;;  %v1071_v39 = vsel %vm1066_vm1, %v3627_v31, 0 }
  0xe4   : > { %v1052_v34 = vpack.c.bf16 %v1045_v33, %v1045_v33 }
  0xe6   : > { %v1063_v35 = vunpack.c.l.b16 %v1052_v34 }
  0xe8   : > { %v3632_v36 = vpack.c.b16 %v1063_v35, %v1063_v35 }
  0xe9   : > { %v1046_v37 = vpop.f32.mrf.mxu1 }
  0xea   : > { %1243 = vrot.lane.b32.xlu0 %v3632_v36, %s3322_s25  ;;  %1152 = vrot.lane.b32.xlu2 %v1057_v30, %s3321_s30  ;;  %v1074_v38 = vsel %vm1066_vm1, %v3632_v36, 0 }
  0xeb   : > { %1156 = vrot.lane.b32.xlu1 %v3632_v36, %s3321_s30  ;;  %1082 = vmatpush.bf16.xpose.msra.mxu2 %v1074_v38 }
  0xf2   : > { %1241 = vrot.lane.b32.xlu0 %v3627_v31, %s3322_s25  ;;  %1326 = vrot.lane.b32.xlu2 %v1057_v30, %s3323_s27 }
  0xf3   : > { %1328 = vrot.lane.b32.xlu1 %v3627_v31, %s3323_s27  ;;  %1083 = vmatpush.bf16.xpose.msra.mxu2 %v1071_v39 }
  0xfa   : > { %1330 = vrot.lane.b32.xlu0 %v3632_v36, %s3323_s27  ;;  %2720 = vmatmul.msk.bf16.vlgmr.msra.gmra.mxu2 %vm1066_vm1, %v1057_v30 }
 0x13c   : > { %v1155_v45 = vpop.permute.xlu2 %1154 }
 0x13d   : > { %v1162_v48 = vsel %vm1066_vm1, %v1155_v45, 0 }
 0x144   : > { %v1153_v50 = vpop.permute.xlu2 %1152 }
 0x14c   : > { %v1327_v54 = vpop.permute.xlu2 %1326 }
 0x152   : > { %v1240_v40 = vpop.permute.xlu1 %1239 }
 0x15c   : > { %v1244_v41 = vpop.permute.xlu0 %1243 }
 0x15d   : > { %v1157_v42 = vpop.permute.xlu1 %1156  ;;  %v1252_v43 = vsel %vm1066_vm1, %v1244_v41, 0  ;;  %v2827_v41 = vld [vmem:[#allocation2] sm:$0xff] }
 0x15e   : > { %v1165_v44 = vsel %vm1066_vm1, %v1157_v42, 0  ;;  %1260 = vmatpush.bf16.xpose.msrb.mxu2 %v1252_v43  ;;  %v2826_v43 = vld [vmem:[%s4271_s9 + $0x8] sm:$0xff] }
 0x15f   : > { %1173 = vmatpush.bf16.xpose.msrb.mxu0 %v1165_v44  ;;  %v2825_v44 = vld [vmem:[%s4272_s26] sm:$0xff] }
 0x164   : > { %v1242_v46 = vpop.permute.xlu0 %1241 }
 0x165   : > { %v1249_v47 = vsel %vm1066_vm1, %v1242_v46, 0  ;;  %v1329_v52 = vpop.permute.xlu1 %1328 }
 0x166   : > { %1261 = vmatpush.bf16.xpose.msrb.mxu2 %v1249_v47  ;;  %v1336_v53 = vsel %vm1066_vm1, %v1329_v52, 0 }
 0x167   : > { %1174 = vmatpush.bf16.xpose.msrb.mxu0 %v1162_v48 }
 0x16c   : > { %v1331_v49 = vpop.permute.xlu0 %1330 }
 0x16d   : > { %2724 = vmatmul.msk.bf16.vlgmr.msrb.gmra.mxu2 %vm1066_vm1, %v1240_v40  ;;  %v1339_v51 = vsel %vm1066_vm1, %v1331_v49, 0  ;;  %v2828_v40 = vld [vmem:[#allocation2 + $0x8] sm:$0xff] }
 0x16e   : > { %2722 = vmatmul.msk.bf16.vlgmr.msrb.gmra.mxu0 %vm1066_vm1, %v1153_v50  ;;  %1347 = vmatpush.bf16.xpose.msrb.mxu1 %v1339_v51 }
 0x176   : > { %1348 = vmatpush.bf16.xpose.msrb.mxu1 %v1336_v53 }
 0x17d   : > { %2726 = vmatmul.msk.bf16.vlgmr.msrb.gmra.mxu1 %vm1066_vm1, %v1327_v54  ;;  %v1085_v55 = vpop.f32.mrf.mxu2 }
 0x17e   : > { %v1090_v22 = vmul.f32 0.35355338, %v1085_v55  ;;  %1614 = vmatpush.bf16.msra.mxu1 %v2828_v40 }
 0x180   : > { %v1093_v23 = vsel %vm1092_vm2, %v1090_v22, -inf }
 0x182   : > { %1615 = vmatpush.bf16.msra.mxu1 %v2827_v41 }
 0x185   : > { %v1087_v56 = vpop.f32.mrf.mxu2 }
 0x186   : > { %v1091_v24 = vmul.f32 0.35355338, %v1087_v56 }
 0x188   : > { %v1096_v26 = vsel %vm1092_vm2, %v1091_v24, -inf }
 0x18d   : > { %2755 = vmatmul.msk.bf16.vlgmr.msra.gmra.mxu1 %vm989_vm0, %v3608_v8 }
 0x1eb   : > { %v1176_v63 = vpop.f32.mrf.mxu0 }
 0x1ec   : > { %v1181_v0 = vmul.f32 0.35355338, %v1176_v63 }
 0x1ee   : > { %v1183_v1 = vsel %vm1092_vm2, %v1181_v0, -inf }
 0x1f0   : > { %v1263_v57 = vpop.f32.mrf.mxu2 }
 0x1f1   : > { %v1268_v58 = vmul.f32 0.35355338, %v1263_v57 }
 0x1f3   : > { %v1270_v59 = vsel %vm1092_vm2, %v1268_v58, -inf  ;;  %v1178_v27 = vpop.f32.mrf.mxu0 }
 0x1f4   : > { %1271 = vmax.xlane.f32.xlu0 %v1270_v59  ;;  %v1182_v28 = vmul.f32 0.35355338, %v1178_v27 }
 0x1f6   : > { %v1186_v29 = vsel %vm1092_vm2, %v1182_v28, -inf }
 0x1f8   : > { %v1265_v60 = vpop.f32.mrf.mxu2 }
 0x1f9   : > { %v1269_v61 = vmul.f32 0.35355338, %v1265_v60 }
 0x1fa   : > { %v1350_v2 = vpop.f32.mrf.mxu1 }
 0x1fb   : > { %v1273_v62 = vsel %vm1092_vm2, %v1269_v61, -inf  ;;  %v3667_v3 = vmul.f32 0.35355338, %v1350_v2 }
 0x1fc   : > { %1274 = vmax.xlane.f32.xlu1 %v1273_v62 }
 0x1fd   : > { %v1357_v4 = vsel %vm1092_vm2, %v3667_v3, -inf }
 0x202   : > { %v1352_v30 = vpop.f32.mrf.mxu1 }
 0x203   : > { %v3685_v32 = vmul.f32 0.35355338, %v1352_v30 }
 0x205   : > { %v1360_v33 = vsel %vm1092_vm2, %v3685_v32, -inf }
 0x208   : > { %1303 = vrot.lane.b32.xlu0 %v3632_v36, %s4225_s10 }
 0x215   : > { %1301 = vrot.lane.b32.xlu1 %v3627_v31, %s4225_s10  ;;  %s4274_s10 = sld [smem:[#allocation34_spill]] }
 0x232   : > { %1184 = vmax.xlane.f32.xlu0 %v1183_v1 }
 0x23f   : > { %1358 = vmax.xlane.f32.xlu1 %v1357_v4 }
 0x246   : > { %1124 = vrot.lane.b32.xlu0 %v3627_v31, %s3325_s2 }
 0x24e   : > { %1214 = vrot.lane.b32.xlu0 %v3627_v31, %s3326_s12 }
 0x256   : > { %1390 = vrot.lane.b32.xlu0 %v3632_v36, %s3328_s1 }
 0x267   : > { %v1272_v6 = vpop.xlane.xlu0 %1271 }
 0x268   : > { %v1276_v7 = vsub.f32 %v1268_v58, %v1272_v6 }
 0x26a   : > { %v1278_v10 = vmul.f32 1.442695, %v1276_v7 }
 0x26c   : > { %2986 = vpow2.f32 %v1278_v10 }
 0x26f   : > { %v1275_v12 = vpop.xlane.xlu1 %1274 }
 0x270   : > { %v1277_v13 = vsub.f32 %v1269_v61, %v1275_v12 }
 0x272   : > { %v2987_v14 = vpop.eup %2986  ;;  %v1280_v15 = vmul.f32 1.442695, %v1277_v13 }
 0x273   : > { %v1282_v16 = vsel %vm1092_vm2, %v2987_v14, 0.0 }
 0x274   : > { %2988 = vpow2.f32 %v1280_v15  ;;  %1283 = vadd.xlane.f32.xlu2 %v1282_v16 }
 0x27a   : > { %v2989_v18 = vpop.eup %2988  ;;  %v1304_v19 = vpop.permute.xlu0 %1303 }
 0x27b   : > { %v1310_v20 = vand.u32 %v1304_v19, %v3678_v17  ;;  %v1285_v21 = vsel %vm1092_vm2, %v2989_v18, 0.0 }
 0x27c   : > { %1286 = vadd.xlane.f32.xlu2 %v1285_v21 }
 0x27d   : > { %1318 = vmatpush.bf16.msra.mxu0 %v1310_v20 }
 0x284   : > { %1094 = vmax.xlane.f32.xlu2 %v1093_v23 }
 0x287   : > { %v1302_v25 = vpop.permute.xlu1 %1301 }
 0x288   : > { %1319 = vmatpush.bf16.msra.mxu0 %v1302_v25 }
 0x28c   : > { %1097 = vmax.xlane.f32.xlu2 %v1096_v26  ;;  %1581 = vmatpush.bf16.msrb.mxu0 %v2826_v43 }
 0x290   : > { %1582 = vmatpush.bf16.msrb.mxu0 %v2825_v44  ;;  %v2975_v44 = vld [vmem:[%s4274_s10] ss:$0 sm:$0xff] }
 0x294   : > { %1187 = vmax.xlane.f32.xlu2 %v1186_v29 }
 0x29c   : > { %1361 = vmax.xlane.f32.xlu2 %v1360_v33 }
 0x2a5   : > { %v1185_v34 = vpop.xlane.xlu0 %1184 }
 0x2a6   : > { %v1189_v35 = vsub.f32 %v1181_v0, %v1185_v34 }
 0x2a8   : > { %v1191_v37 = vmul.f32 1.442695, %v1189_v35 }
 0x2aa   : > { %2990 = vpow2.f32 %v1191_v37 }
 0x2b0   : > { %v3689_v38 = vpop.eup %2990 }
 0x2b1   : > { %v1195_v39 = vsel %vm1092_vm2, %v3689_v38, 0.0 }
 0x2b2   : > { %1196 = vadd.xlane.f32.xlu1 %v1195_v39  ;;  %v1359_v62 = vpop.xlane.xlu1 %1358 }
 0x2b3   : > { %v1363_v2 = vsub.f32 %v3667_v3, %v1359_v62 }
 0x2b5   : > { %v1365_v6 = vmul.f32 1.442695, %v1363_v2 }
 0x2b8   : > { %v1125_v27 = vpop.permute.xlu0 %1124 }
 0x2c0   : > { %v1215_v40 = vpop.permute.xlu0 %1214 }
 0x2e7   : > { %v1284_v42 = vpop.xlane.xlu2 %1283 }
 0x2e8   : > { %2992 = vrcp.f32 %v1284_v42 }
 0x2ee   : > { %v2993_v46 = vpop.eup %2992 }
 0x2ef   : > { %v1287_v45 = vpop.xlane.xlu2 %1286  ;;  %v3701_v47 = vmul.f32 %v2993_v46, %v2987_v14 }
 0x2f0   : > { %2994 = vrcp.f32 %v1287_v45 }
 0x2f1   : > { %v1294_v49 = vpack.c.bf16 %v3701_v47, %v3701_v47 }
 0x2f3   : > { %v1298_v54 = vunpack.c.l.b16 %v1294_v49 }
 0x2f6   : > { %v2995_v48 = vpop.eup %2994 }
 0x2f7   : > { %v3705_v50 = vmul.f32 %v2995_v48, %v2989_v18  ;;  %v1095_v51 = vpop.xlane.xlu2 %1094  ;;  %v2974_v18 = vld [vmem:[%s4273_s29] ss:$0 sm:$0xff]  ;;  %s4226_s29 = sshll.u32 %s3760_s4, 4 }
 0x2f8   : > { %v1099_v8 = vsub.f32 %v1090_v22, %v1095_v51  ;;  %s3770_s9 = scalar_lea.vmem [#allocation11], %s4226_s29  ;;  %s4275_s29 = sld [smem:[#allocation31_spill]] }
 0x2f9   : > { %v1295_v52 = vpack.c.bf16 %v3705_v50, %v3705_v50 }
 0x2fa   : > { %v1101_v53 = vmul.f32 1.442695, %v1099_v8 }
 0x2fb   : > { %v1299_v55 = vunpack.c.l.b16 %v1295_v52 }
 0x2fc   : > { %2996 = vpow2.f32 %v1101_v53 }
 0x2fd   : > { %v1300_v56 = vpack.c.b16 %v1299_v55, %v1298_v54 }
 0x2ff   : > { %2725 = vmatmul.msk.bf16.vlgmr.msra.gmra.mxu0 %vm1092_vm2, %v1300_v56  ;;  %v1098_v57 = vpop.xlane.xlu2 %1097 }
 0x300   : > { %v1100_v58 = vsub.f32 %v1091_v24, %v1098_v57  ;;  %v1391_v57 = vpop.permute.xlu0 %1390 }
 0x301   : > { %v1397_v62 = vand.u32 %v1391_v57, %v3678_v17 }
 0x302   : > { %v2997_v59 = vpop.eup %2996  ;;  %v1103_v60 = vmul.f32 1.442695, %v1100_v58 }
 0x303   : > { %v1105_v61 = vsel %vm1092_vm2, %v2997_v59, 0.0 }
 0x304   : > { %2998 = vpow2.f32 %v1103_v60  ;;  %1106 = vadd.xlane.f32.xlu2 %v1105_v61 }
 0x307   : > { %v1188_v63 = vpop.xlane.xlu2 %1187 }
 0x308   : > { %v1190_v0 = vsub.f32 %v1182_v28, %v1188_v63 }
 0x30a   : > { %v2999_v1 = vpop.eup %2998  ;;  %v1193_v4 = vmul.f32 1.442695, %v1190_v0 }
 0x30b   : > { %v1108_v5 = vsel %vm1092_vm2, %v2999_v1, 0.0 }
 0x30c   : > { %3000 = vpow2.f32 %v1193_v4  ;;  %1109 = vadd.xlane.f32.xlu2 %v1108_v5 }
 0x30d   : > { %3002 = vpow2.f32 %v1365_v6 }
 0x30f   : > { %2745 = vmatmul.msk.bf16.vlgmr.msrb.gmra.mxu0 %vm989_vm0, %v3610_v9  ;;  %v1362_v9 = vpop.xlane.xlu2 %1361 }
 0x310   : > { %v1364_v13 = vsub.f32 %v3685_v32, %v1362_v9 }
 0x312   : > { %v3715_v7 = vpop.eup %3000  ;;  %v1367_v14 = vmul.f32 1.442695, %v1364_v13 }
 0x313   : > { %v1198_v10 = vsel %vm1092_vm2, %v3715_v7, 0.0  ;;  %v3719_v12 = vpop.eup %3002 }
 0x314   : > { %1199 = vadd.xlane.f32.xlu1 %v1198_v10  ;;  %v1369_v3 = vsel %vm1092_vm2, %v3719_v12, 0.0  ;;  %3004 = vpow2.f32 %v1367_v14 }
 0x31a   : > { %v3732_v15 = vpop.eup %3004 }
 0x31b   : > { %v1372_v16 = vsel %vm1092_vm2, %v3732_v15, 0.0 }
 0x31c   : > { %1370 = vadd.xlane.f32.xlu1 %v1369_v3 }
 0x31f   : > { %2746 = vmatmul.msk.bf16.gmra.mxu0 %vm989_vm0, %v3617_v11  ;;  %v1617_v11 = vpop.f32.mrf.mxu1 }
 0x324   : > { %1126 = vrot.lane.b32.xlu2 %v3632_v36, %s3325_s2 }
 0x325   : > { %v1197_v28 = vpop.xlane.xlu1 %1196 }
 0x327   : > { %v1619_v20 = vpop.f32.mrf.mxu1 }
 0x32c   : > { %1216 = vrot.lane.b32.xlu2 %v3632_v36, %s3326_s12  ;;  %v1618_v36 = vadd.f32 %v2974_v18, %v1617_v11 }
 0x32e   : > { %v1625_v19 = vpack.c.bf16 %v1618_v36, %v1618_v36 }
 0x330   : > { %v1637_v21 = vunpack.c.l.b16 %v1625_v19 }
 0x335   : > { %1388 = vrot.lane.b32.xlu1 %v3627_v31, %s3328_s1  ;;  %v1620_v31 = vadd.f32 %v2974_v18, %v1619_v20 }
 0x337   : > { %v1626_v22 = vpack.c.bf16 %v1620_v31, %v1620_v31 }
 0x339   : > { %v1638_v23 = vunpack.c.l.b16 %v1626_v22 }
 0x33b   : > { %v3739_v24 = vpack.c.b16 %v1638_v23, %v1637_v21 }
 0x33d   : > { %1749 = vrot.lane.b32.xlu0 %v3739_v24, %s3321_s30  ;;  %v1647_v20 = vsel %vm1066_vm1, %v3739_v24, 0 }
 0x355   : > { %1373 = vadd.xlane.f32.xlu2 %v1372_v16 }
 0x377   : > { %v1107_v25 = vpop.xlane.xlu2 %1106 }
 0x378   : > { %3006 = vrcp.f32 %v1107_v25 }
 0x37c   : > { %v3743_v26 = vpop.f32.mrf.mxu0 }
 0x37e   : > { %v3007_v30 = vpop.eup %3006 }
 0x37f   : > { %v1110_v29 = vpop.xlane.xlu2 %1109  ;;  %v1113_v33 = vmul.f32 %v3007_v30, %v2997_v59 }
 0x380   : > { %3008 = vrcp.f32 %v1110_v29 }
 0x381   : > { %3010 = vrcp.f32 %v1197_v28  ;;  %v1117_v42 = vpack.c.bf16 %v1113_v33, %v1113_v33 }
 0x383   : > { %v1121_v49 = vunpack.c.l.b16 %v1117_v42 }
 0x384   : > { %v3745_v32 = vpop.f32.mrf.mxu0 }
 0x385   : > { %v2945_v21 = vpack.i.bf16 %v3745_v32, %v3743_v26 }
 0x386   : > { %v3009_v34 = vpop.eup %3008 }
 0x387   : > { %v3747_v35 = vmul.f32 %v3009_v34, %v2999_v1  ;;  %v1200_v37 = vpop.xlane.xlu1 %1199  ;;  %v1127_v39 = vpop.permute.xlu2 %1126 }
 0x388   : > { %v1136_v41 = vand.u32 %v3678_v17, %v1127_v39  ;;  %3012 = vrcp.f32 %v1200_v37  ;;  %v3011_v48 = vpop.eup %3010 }
 0x389   : > { %v1118_v43 = vpack.c.bf16 %v3747_v35, %v3747_v35  ;;  %v1203_v55 = vmul.f32 %v3011_v48, %v3689_v38 }
 0x38a   : > { %1144 = vmatpush.bf16.msra.mxu3 %v1136_v41 }
 0x38b   : > { %v1122_v45 = vunpack.c.l.b16 %v1118_v43  ;;  %v1205_v58 = vadd.f32 %v1203_v55, %v1113_v33  ;;  %v1207_v6 = vpack.c.bf16 %v1203_v55, %v1203_v55 }
 0x38c   : > { %v1584_v46 = vpop.f32.mrf.mxu0 }
 0x38d   : > { %v1585_v51 = vadd.f32 %v2975_v44, %v1584_v46  ;;  %v1123_v53 = vpack.c.b16 %v1122_v45, %v1121_v49  ;;  %v1292_v38 = vadd.f32 %v3701_v47, %v1205_v58  ;;  %v1211_v16 = vunpack.c.l.b16 %v1207_v6 }
 0x38e   : > { %1145 = vmatpush.bf16.msra.mxu3 %v1125_v27  ;;  %v3013_v54 = vpop.eup %3012 }
 0x38f   : > { %v1371_v8 = vpop.xlane.xlu1 %1370  ;;  %v1217_v52 = vpop.permute.xlu2 %1216  ;;  %v1204_v59 = vmul.f32 %v3013_v54, %v3715_v7  ;;  %v1622_v60 = vpack.c.bf16 %v1585_v51, %v1585_v51 }
 0x390   : > { %3014 = vrcp.f32 %v1371_v8  ;;  %v1223_v56 = vand.u32 %v1217_v52, %v3678_v17 }
 0x391   : > { %2721 = vmatmul.msk.bf16.vlgmr.msra.gmra.mxu3 %vm1092_vm2, %v1123_v53  ;;  %v1208_v1 = vpack.c.bf16 %v1204_v59, %v1204_v59  ;;  %v1630_v2 = vunpack.c.l.b16 %v1622_v60  ;;  %v1206_v23 = vadd.f32 %v1204_v59, %v3747_v35 }
 0x392   : > { %1231 = vmatpush.bf16.msrb.mxu3 %v1223_v56 }
 0x393   : > { %v1212_v13 = vunpack.c.l.b16 %v1208_v1  ;;  %v1293_v28 = vadd.f32 %v3705_v50, %v1206_v23 }
 0x394   : > { %v1586_v61 = vpop.f32.mrf.mxu0 }
 0x395   : > { %v1587_v63 = vadd.f32 %v2975_v44, %v1586_v61 }
 0x396   : > { %v3015_v0 = vpop.eup %3014  ;;  %1232 = vmatpush.bf16.msrb.mxu3 %v1215_v40 }
 0x397   : > { %v1377_v4 = vmul.f32 %v3015_v0, %v3719_v12  ;;  %v1623_v5 = vpack.c.bf16 %v1587_v63, %v1587_v63  ;;  %v1213_v12 = vpack.c.b16 %v1212_v13, %v1211_v16 }
 0x399   : > { %v1379_v7 = vadd.f32 %v1377_v4, %v1292_v38  ;;  %v1631_v10 = vunpack.c.l.b16 %v1623_v5  ;;  %v1381_v27 = vpack.c.bf16 %v1377_v4, %v1377_v4 }
 0x39a   : > { %1405 = vmatpush.bf16.msra.mxu3 %v1397_v62 }
 0x39b   : > { %v1478_v3 = vmul.f32 0.25, %v1379_v7  ;;  %v1633_v9 = vpack.c.b16 %v1631_v10, %v1630_v2  ;;  %v1385_v34 = vunpack.c.l.b16 %v1381_v27  ;;  %v2823_v27 = vld [vmem:[%s4275_s29] sm:$0xff] }
 0x39c   : > { %v1589_v14 = vpop.f32.mrf.mxu0 }
 0x39d   : > { %1745 = vrot.lane.b32.xlu0 %v1633_v9, %s3321_s30  ;;  %v1590_v47 = vadd.f32 %v2975_v44, %v1589_v14  ;;  %1965 = vrot.lane.b32.xlu2 %v1633_v9, %s3323_s27  ;;  %2459 = vst.msk [vmem:[%s3770_s9] sm:$0xff] %vm1092_vm2, %v1478_v3 }
 0x39f   : > { %v1624_v11 = vpack.c.bf16 %v1590_v47, %v1590_v47 }
 0x3a1   : > { %2723 = vmatmul.msk.bf16.vlgmr.msrb.gmra.mxu3 %vm1092_vm2, %v1213_v12  ;;  %v1632_v18 = vunpack.c.l.b16 %v1624_v11  ;;  %v2824_v11 = vld [vmem:[%s4275_s29 + $0x8] sm:$0xff] }
 0x3a2   : > { %1470 = vmatpush.bf16.msra.mxu2 %v2824_v11 }
 0x3a3   : > { %v1634_v36 = vpack.c.b16 %v1632_v18, %v1632_v18 }
 0x3a4   : > { %v1591_v19 = vpop.f32.mrf.mxu0 }
 0x3a5   : > { %1859 = vrot.lane.b32.xlu0 %v3739_v24, %s3322_s25  ;;  %1747 = vrot.lane.b32.xlu1 %v1634_v36, %s3321_s30  ;;  %s3329_s30 = smov 16  }
 0x3a6   : > { %1471 = vmatpush.bf16.msra.mxu2 %v2823_v27 }
 0x3a7   : > { %v1389_v31 = vpop.permute.xlu1 %1388 }
 0x3a8   : > { %1406 = vmatpush.bf16.msra.mxu3 %v1389_v31 }
 0x3ac   : > { %1656 = vmatpush.bf16.xpose.msrb.mxu3 %v1647_v20 }
 0x3ad   : > { %1855 = vrot.lane.b32.xlu0 %v1633_v9, %s3322_s25  ;;  %1969 = vrot.lane.b32.xlu1 %v3739_v24, %s3323_s27 }
 0x3af   : > { %v1750_v32 = vpop.permute.xlu0 %1749 }
 0x3b0   : > { %v1758_v35 = vsel %vm1066_vm1, %v1750_v32, 0 }
 0x3b1   : > { %1767 = vmatpush.bf16.xpose.msrb.mxu1 %v1758_v35 }
 0x3b5   : > { %1857 = vrot.lane.b32.xlu0 %v1634_v36, %s3322_s25  ;;  %1967 = vrot.lane.b32.xlu1 %v1634_v36, %s3323_s27  ;;  %s4227_s25 = smov 8   ;;  %s3331_s27 = smov 24  }
 0x3bd   : > { %2946 = vrot.lane.b32.xlu0 %v2945_v21, %s3329_s30 }
 0x3c8   : > { %v1374_v22 = vpop.xlane.xlu2 %1373 }
 0x3c9   : > { %3016 = vrcp.f32 %v1374_v22 }
 0x3cf   : > { %v3017_v25 = vpop.eup %3016 }
 0x3d0   : > { %v1378_v29 = vmul.f32 %v3017_v25, %v3732_v15 }
 0x3d2   : > { %v1380_v30 = vadd.f32 %v1378_v29, %v1293_v28  ;;  %v1382_v33 = vpack.c.bf16 %v1378_v29, %v1378_v29 }
 0x3d4   : > { %v1386_v37 = vunpack.c.l.b16 %v1382_v33  ;;  %v1479_v39 = vmul.f32 0.25, %v1380_v30 }
 0x3d6   : > { %v1387_v26 = vpack.c.b16 %v1386_v37, %v1385_v34  ;;  %2460 = vst.msk [vmem:[%s3770_s9 + $0x8] sm:$0xff] %vm1092_vm2, %v1479_v39 }
 0x3d8   : > { %2727 = vmatmul.msk.bf16.vlgmr.msra.gmra.mxu3 %vm1092_vm2, %v1387_v26 }
 0x3e8   : > { %2756 = vmatmul.msk.bf16.vlgmr.msrb.gmra.mxu3 %vm1066_vm1, %v1633_v9 }
 0x3f7   : > { %v1966_v8 = vpop.permute.xlu2 %1965 }
 0x3f8   : > { %2757 = vmatmul.msk.bf16.gmra.mxu3 %vm1066_vm1, %v1634_v36 }
 0x40f   : > { %v1746_v50 = vpop.permute.xlu0 %1745 }
 0x410   : > { %2760 = vmatmul.msk.bf16.vlgmr.msrb.gmra.mxu1 %vm1066_vm1, %v1746_v50 }
 0x414   : > { %v3798_v15 = vpop.f32.mrf.mxu3 }
 0x417   : > { %v1860_v40 = vpop.permute.xlu0 %1859  ;;  %v1748_v41 = vpop.permute.xlu1 %1747 }
 0x418   : > { %v1868_v42 = vsel %vm1066_vm1, %v1860_v40, 0 }
 0x419   : > { %1877 = vmatpush.bf16.xpose.msra.mxu3 %v1868_v42 }
 0x41c   : > { %v3801_v43 = vpop.f32.mrf.mxu3 }
 0x41f   : > { %v1856_v44 = vpop.permute.xlu0 %1855  ;;  %v1970_v45 = vpop.permute.xlu1 %1969 }
 0x420   : > { %2761 = vmatmul.msk.bf16.gmra.mxu1 %vm1066_vm1, %v1748_v41  ;;  %2764 = vmatmul.msk.bf16.vlgmr.msra.gmra.mxu3 %vm1066_vm1, %v1856_v44  ;;  %v1978_v46 = vsel %vm1066_vm1, %v1970_v45, 0 }
 0x421   : > { %1987 = vmatpush.bf16.xpose.msra.mxu1 %v1978_v46 }
 0x424   : > { %v1234_v48 = vpop.f32.mrf.mxu3 }
 0x427   : > { %v1858_v52 = vpop.permute.xlu0 %1857  ;;  %v1968_v53 = vpop.permute.xlu1 %1967 }
 0x42c   : > { %v1236_v49 = vpop.f32.mrf.mxu3 }
 0x42d   : > { %v2940_v51 = vpack.i.bf16 %v1236_v49, %v1234_v48 }
 0x42f   : > { %2941 = vrot.lane.b32.xlu2 %v2940_v51, %s4227_s25  ;;  %v2947_v35 = vpop.permute.xlu0 %2946 }
 0x430   : > { %2765 = vmatmul.msk.bf16.gmra.mxu3 %vm1066_vm1, %v1858_v52  ;;  %2768 = vmatmul.msk.bf16.vlgmr.msra.gmra.mxu1 %vm1066_vm1, %v1966_v8  ;;  %v2949_v41 = vunpack.i.h.bf16 %v2947_v35  ;;  %v2948_v42 = vunpack.i.l.bf16 %v2947_v35 }
 0x440   : > { %2769 = vmatmul.msk.bf16.gmra.mxu1 %vm1066_vm1, %v1968_v53 }
 0x45b   : > { %v1408_v54 = vpop.f32.mrf.mxu3 }
 0x463   : > { %v1410_v55 = vpop.f32.mrf.mxu3 }
 0x464   : > { %v2950_v56 = vpack.i.bf16 %v1410_v55, %v1408_v54 }
 0x466   : > { %2951 = vrot.lane.b32.xlu1 %v2950_v56, %s3331_s27 }
 0x46b   : > { %v1658_v57 = vpop.f32.mrf.mxu3 }
 0x46c   : > { %v3811_v58 = vmul.f32 0.35355338, %v1658_v57 }
 0x46e   : > { %v1670_v59 = vsel %vm1439_vm4, %v3811_v58, -inf }
 0x46f   : > { %1671 = vmax.xlane.f32.xlu0 %v1670_v59 }
 0x473   : > { %v1660_v60 = vpop.f32.mrf.mxu3 }
 0x474   : > { %v3815_v63 = vmul.f32 0.35355338, %v1660_v60 }
 0x476   : > { %v1673_v1 = vsel %vm1439_vm4, %v3815_v63, -inf }
 0x47b   : > { %v1663_v61 = vpop.f32.mrf.mxu3 }
 0x47c   : > { %v3823_v4 = vmul.f32 0.35355338, %v1663_v61 }
 0x47e   : > { %v1677_v7 = vsel %vm1676_vm5, %v3823_v4, -inf }
 0x483   : > { %v1665_v62 = vpop.f32.mrf.mxu3 }
 0x489   : > { %v2942_v39 = vpop.permute.xlu2 %2941 }
 0x48a   : > { %v2944_v26 = vunpack.i.h.bf16 %v2942_v39  ;;  %v2943_v32 = vunpack.i.l.bf16 %v2942_v39 }
 0x48c   : > { %v1438_v50 = vsel %vm1066_vm1, %v3801_v43, %v2944_v26  ;;  %v1437_v40 = vsel %vm1066_vm1, %v3798_v15, %v2943_v32 }
 0x48d   : > { %v1769_v0 = vpop.f32.mrf.mxu1  ;;  %v1440_v48 = vsel %vm1439_vm4, %v1437_v40, %v2948_v42  ;;  %v1441_v49 = vsel %vm1439_vm4, %v1438_v50, %v2949_v41 }
 0x48e   : > { %v3817_v38 = vmul.f32 0.35355338, %v1769_v0 }
 0x490   : > { %1674 = vmax.xlane.f32.xlu1 %v1673_v1  ;;  %v1781_v2 = vsel %vm1439_vm4, %v3817_v38, -inf }
 0x491   : > { %1782 = vmax.xlane.f32.xlu2 %v1781_v2 }
 0x495   : > { %v1771_v5 = vpop.f32.mrf.mxu1 }
 0x496   : > { %v3825_v6 = vmul.f32 0.35355338, %v1771_v5 }
 0x498   : > { %1678 = vmax.xlane.f32.xlu1 %v1677_v7  ;;  %v1784_v10 = vsel %vm1439_vm4, %v3825_v6, -inf }
 0x499   : > { %1785 = vmax.xlane.f32.xlu0 %v1784_v10 }
 0x49d   : > { %v1774_v3 = vpop.f32.mrf.mxu1 }
 0x49e   : > { %v3831_v9 = vmul.f32 0.35355338, %v1774_v3 }
 0x4a0   : > { %v1787_v13 = vsel %vm1676_vm5, %v3831_v9, -inf }
 0x4a1   : > { %1788 = vmax.xlane.f32.xlu0 %v1787_v13 }
 0x4a3   : > { %v1879_v14 = vpop.f32.mrf.mxu3 }
 0x4a4   : > { %v3835_v16 = vmul.f32 0.35355338, %v1879_v14 }
 0x4a5   : > { %v1776_v47 = vpop.f32.mrf.mxu1 }
 0x4a6   : > { %v1891_v12 = vsel %vm1439_vm4, %v3835_v16, -inf }
 0x4a7   : > { %1892 = vmax.xlane.f32.xlu1 %v1891_v12 }
 0x4ab   : > { %v1881_v18 = vpop.f32.mrf.mxu3 }
 0x4ac   : > { %v3842_v36 = vmul.f32 0.35355338, %v1881_v18 }
 0x4ad   : > { %v1989_v19 = vpop.f32.mrf.mxu1 }
 0x4ae   : > { %v1894_v20 = vsel %vm1439_vm4, %v3842_v36, -inf  ;;  %v3877_v56 = vmul.f32 0.35355338, %v1989_v19 }
 0x4af   : > { %1895 = vmax.xlane.f32.xlu2 %v1894_v20 }
 0x4b0   : > { %v2001_v57 = vsel %vm1439_vm4, %v3877_v56, -inf }
 0x4b3   : > { %v1884_v31 = vpop.f32.mrf.mxu3 }
 0x4b4   : > { %v3846_v21 = vmul.f32 0.35355338, %v1884_v31 }
 0x4b5   : > { %v1991_v22 = vpop.f32.mrf.mxu1 }
 0x4b6   : > { %v1897_v23 = vsel %vm1676_vm5, %v3846_v21, -inf  ;;  %v3850_v25 = vmul.f32 0.35355338, %v1991_v22 }
 0x4b7   : > { %1898 = vmax.xlane.f32.xlu1 %v1897_v23 }
 0x4b8   : > { %v2004_v30 = vsel %vm1439_vm4, %v3850_v25, -inf }
 0x4bb   : > { %v1886_v28 = vpop.f32.mrf.mxu3 }
 0x4bd   : > { %v1994_v29 = vpop.f32.mrf.mxu1 }
 0x4be   : > { %v3857_v33 = vmul.f32 0.35355338, %v1994_v29 }
 0x4bf   : > { %2005 = vmax.xlane.f32.xlu1 %v2004_v30 }
 0x4c0   : > { %v2007_v34 = vsel %vm1676_vm5, %v3857_v33, -inf }
 0x4c5   : > { %v1996_v37 = vpop.f32.mrf.mxu1 }
 0x4c7   : > { %2008 = vmax.xlane.f32.xlu1 %v2007_v34 }
 0x4d8   : > { %v2952_v44 = vpop.permute.xlu1 %2951 }
 0x4d9   : > { %v2954_v45 = vunpack.i.h.bf16 %v2952_v44  ;;  %v2953_v46 = vunpack.i.l.bf16 %v2952_v44 }
 0x4db   : > { %v1443_v51 = vsel %vm1442_vm6, %v1440_v48, %v2953_v46  ;;  %v1444_v8 = vsel %vm1442_vm6, %v1441_v49, %v2954_v45 }
 0x4dc   : > { %v1445_v52 = vpack.c.bf16 %v1444_v8, %v1443_v51 }
 0x4de   : > { %2736 = vmatmul.msk.bf16.vlgmr.msra.gmra.mxu2 %vm989_vm0, %v1445_v52 }
 0x4e0   : > { %1828 = vrot.lane.b32.xlu1 %v3739_v24, %s3326_s12  ;;  %s4277_s12 = smul.u32 24, %s3576_s24  ;;  %s2837_s24 = sshll.u32 %s3500_s3, 4 }
 0x4e2   : > { %v1672_v15 = vpop.xlane.xlu0 %1671  ;;  %s3965_s10 = scalar_lea.vmem %s4209_s28, %s4277_s12  ;;  %s4278_s12 = sld [smem:[#allocation32_spill]] }
 0x4e3   : > { %v1680_v43 = vsub.f32 %v3811_v58, %v1672_v15 }
 0x4e5   : > { %v1683_v53 = vmul.f32 1.442695, %v1680_v43 }
 0x4e7   : > { %3018 = vpow2.f32 %v1683_v53 }
 0x4ed   : > { %v3873_v54 = vpop.eup %3018 }
 0x4ee   : > { %v1689_v55 = vsel %vm1439_vm4, %v3873_v54, 0.0 }
 0x4ef   : > { %1690 = vadd.xlane.f32.xlu0 %v1689_v55 }
 0x4f7   : > { %2002 = vmax.xlane.f32.xlu0 %v2001_v57 }
 0x503   : > { %v1675_v59 = vpop.xlane.xlu1 %1674 }
 0x504   : > { %v1681_v60 = vsub.f32 %v3815_v63, %v1675_v59  ;;  %v1783_v61 = vpop.xlane.xlu2 %1782 }
 0x505   : > { %v1790_v58 = vsub.f32 %v3817_v38, %v1783_v61 }
 0x506   : > { %v1685_v62 = vmul.f32 1.442695, %v1681_v60 }
 0x507   : > { %v1793_v0 = vmul.f32 1.442695, %v1790_v58 }
 0x508   : > { %3020 = vpow2.f32 %v1685_v62 }
 0x509   : > { %3022 = vpow2.f32 %v1793_v0 }
 0x50b   : > { %v1679_v1 = vpop.xlane.xlu1 %1678 }
 0x50c   : > { %v1682_v2 = vsub.f32 %v3823_v4, %v1679_v1  ;;  %v1786_v4 = vpop.xlane.xlu0 %1785 }
 0x50d   : > { %v1791_v12 = vsub.f32 %v3825_v6, %v1786_v4 }
 0x50e   : > { %v3884_v5 = vpop.eup %3020  ;;  %v1687_v7 = vmul.f32 1.442695, %v1682_v2 }
 0x50f   : > { %v3886_v10 = vpop.eup %3022  ;;  %v1692_v3 = vsel %vm1439_vm4, %v3884_v5, 0.0  ;;  %v1795_v18 = vmul.f32 1.442695, %v1791_v12 }
 0x510   : > { %3024 = vpow2.f32 %v1687_v7  ;;  %1693 = vadd.xlane.f32.xlu2 %v1692_v3  ;;  %v1799_v63 = vsel %vm1439_vm4, %v3886_v10, 0.0 }
 0x511   : > { %1800 = vadd.xlane.f32.xlu0 %v1799_v63 }
 0x514   : > { %v1789_v19 = vpop.xlane.xlu0 %1788 }
 0x515   : > { %v1792_v31 = vsub.f32 %v3831_v9, %v1789_v19 }
 0x516   : > { %v3892_v38 = vpop.eup %3024 }
 0x517   : > { %v1695_v13 = vsel %vm1676_vm5, %v3892_v38, 0.0  ;;  %v1797_v23 = vmul.f32 1.442695, %v1792_v31 }
 0x518   : > { %1696 = vadd.xlane.f32.xlu2 %v1695_v13 }
 0x51a   : > { %v1893_v14 = vpop.xlane.xlu1 %1892 }
 0x51b   : > { %v1900_v47 = vsub.f32 %v3835_v16, %v1893_v14 }
 0x51d   : > { %v1903_v11 = vmul.f32 1.442695, %v1900_v47 }
 0x51f   : > { %3026 = vpow2.f32 %v1903_v11 }
 0x520   : > { %3028 = vpow2.f32 %v1795_v18 }
 0x521   : > { %3030 = vpow2.f32 %v1797_v23 }
 0x522   : > { %v1896_v37 = vpop.xlane.xlu2 %1895 }
 0x523   : > { %v1901_v26 = vsub.f32 %v3842_v36, %v1896_v37 }
 0x525   : > { %v3898_v20 = vpop.eup %3026  ;;  %1718 = vrot.lane.b32.xlu0 %v3739_v24, %s3325_s2  ;;  %v1905_v35 = vmul.f32 1.442695, %v1901_v26  ;;  %s4276_s2 = smov 80  }
 0x526   : > { %v1909_v22 = vsel %vm1439_vm4, %v3898_v20, 0.0  ;;  %v3905_v27 = vpop.eup %3028 }
 0x527   : > { %1910 = vadd.xlane.f32.xlu2 %v1909_v22  ;;  %v1802_v6 = vsel %vm1439_vm4, %v3905_v27, 0.0  ;;  %v3909_v29 = vpop.eup %3030 }
 0x528   : > { %v1805_v34 = vsel %vm1676_vm5, %v3909_v29, 0.0 }
 0x52a   : > { %v1899_v16 = vpop.xlane.xlu1 %1898 }
 0x52b   : > { %v1902_v50 = vsub.f32 %v3846_v21, %v1899_v16 }
 0x52f   : > { %1803 = vadd.xlane.f32.xlu2 %v1802_v6 }
 0x532   : > { %v2006_v28 = vpop.xlane.xlu1 %2005 }
 0x533   : > { %v2011_v9 = vsub.f32 %v3850_v25, %v2006_v28  ;;  %v1907_v25 = vmul.f32 1.442695, %v1902_v50 }
 0x535   : > { %v2015_v30 = vmul.f32 1.442695, %v2011_v9 }
 0x537   : > { %3032 = vpow2.f32 %v2015_v30  ;;  %1806 = vadd.xlane.f32.xlu2 %v1805_v34 }
 0x538   : > { %3034 = vpow2.f32 %v1905_v35 }
 0x539   : > { %3036 = vpow2.f32 %v1907_v25 }
 0x53a   : > { %v3920_v40 = vpop.xlane.xlu1 %2008 }
 0x53d   : > { %v3914_v39 = vpop.eup %3032 }
 0x53e   : > { %v2022_v32 = vsel %vm1439_vm4, %v3914_v39, 0.0  ;;  %v3922_v41 = vpop.eup %3034 }
 0x53f   : > { %2023 = vadd.xlane.f32.xlu1 %v2022_v32  ;;  %v1912_v42 = vsel %vm1439_vm4, %v3922_v41, 0.0  ;;  %v3926_v36 = vpop.eup %3036 }
 0x540   : > { %v1915_v45 = vsel %vm1676_vm5, %v3926_v36, 0.0 }
 0x54f   : > { %1913 = vadd.xlane.f32.xlu0 %v1912_v42 }
 0x552   : > { %v1829_v44 = vpop.permute.xlu1 %1828 }
 0x553   : > { %1844 = vmatpush.bf16.msra.mxu0 %v1829_v44 }
 0x557   : > { %1916 = vadd.xlane.f32.xlu0 %v1915_v45 }
 0x562   : > { %v1691_v46 = vpop.xlane.xlu0 %1690 }
 0x56a   : > { %v2003_v21 = vpop.xlane.xlu0 %2002 }
 0x56b   : > { %v2010_v48 = vsub.f32 %v3877_v56, %v2003_v21 }
 0x56d   : > { %v2013_v49 = vmul.f32 1.442695, %v2010_v48 }
 0x56f   : > { %3038 = vpow2.f32 %v2013_v49 }
 0x570   : > { %3040 = vrcp.f32 %v1691_v46 }
 0x575   : > { %v3931_v51 = vpop.eup %3038 }
 0x576   : > { %v2019_v8 = vsel %vm1439_vm4, %v3931_v51, 0.0  ;;  %v3041_v43 = vpop.eup %3040 }
 0x577   : > { %2020 = vadd.xlane.f32.xlu2 %v2019_v8  ;;  %v1701_v57 = vmul.f32 %v3041_v43, %v3873_v54 }
 0x579   : > { %v1707_v62 = vpack.c.bf16 %v1701_v57, %v1701_v57 }
 0x57b   : > { %v1713_v1 = vunpack.c.l.b16 %v1707_v62 }
 0x583   : > { %v1694_v52 = vpop.xlane.xlu2 %1693 }
 0x584   : > { %3042 = vrcp.f32 %v1694_v52  ;;  %v1801_v15 = vpop.xlane.xlu0 %1800 }
 0x585   : > { %3044 = vrcp.f32 %v1801_v15 }
 0x58a   : > { %v3043_v53 = vpop.eup %3042 }
 0x58b   : > { %v3045_v55 = vpop.eup %3044  ;;  %v1702_v59 = vmul.f32 %v3043_v53, %v3884_v5  ;;  %v1697_v58 = vpop.xlane.xlu2 %1696 }
 0x58c   : > { %v1811_v56 = vmul.f32 %v3045_v55, %v3886_v10  ;;  %3046 = vrcp.f32 %v1697_v58 }
 0x58d   : > { %v1708_v61 = vpack.c.bf16 %v1702_v59, %v1702_v59 }
 0x58e   : > { %v1814_v60 = vadd.f32 %v1811_v56, %v1701_v57  ;;  %v1817_v11 = vpack.c.bf16 %v1811_v56, %v1811_v56 }
 0x58f   : > { %1938 = vrot.lane.b32.xlu2 %v3739_v24, %s4276_s2  ;;  %v1714_v0 = vunpack.c.l.b16 %v1708_v61 }
 0x590   : > { %v1823_v22 = vunpack.c.l.b16 %v1817_v11 }
 0x591   : > { %v1716_v54 = vpack.c.b16 %v1714_v0, %v1713_v1 }
 0x592   : > { %v3047_v7 = vpop.eup %3046 }
 0x593   : > { %v1703_v5 = vmul.f32 %v3047_v7, %v3892_v38  ;;  %v2012_v38 = vsub.f32 %v3857_v33, %v3920_v40 }
 0x595   : > { %v1709_v63 = vpack.c.bf16 %v1703_v5, %v1703_v5  ;;  %v2017_v6 = vmul.f32 1.442695, %v2012_v38 }
 0x597   : > { %2048 = vrot.lane.b32.xlu2 %v3739_v24, %s3328_s1  ;;  %v1719_v2 = vpop.permute.xlu0 %1718  ;;  %v1715_v47 = vunpack.c.l.b16 %v1709_v63  ;;  %s2470_s1 = scalar_lea.sflag [#allocation12], %s3760_s4 }
 0x598   : > { %1734 = vmatpush.bf16.msrb.mxu2 %v1719_v2 }
 0x599   : > { %v1717_v24 = vpack.c.b16 %v1715_v47, %v1715_v47 }
 0x59a   : > { %v1911_v10 = vpop.xlane.xlu2 %1910 }
 0x59b   : > { %3048 = vrcp.f32 %v1911_v10  ;;  %2758 = vmatmul.msk.bf16.vlgmr.msrb.gmra.mxu2 %vm1439_vm4, %v1716_v54  ;;  %v1473_v54 = vpop.f32.mrf.mxu2 }
 0x5a1   : > { %v3049_v3 = vpop.eup %3048 }
 0x5a2   : > { %v1921_v13 = vmul.f32 %v3049_v3, %v3898_v20  ;;  %v1804_v4 = vpop.xlane.xlu2 %1803 }
 0x5a3   : > { %3050 = vrcp.f32 %v1804_v4  ;;  %v1475_v7 = vpop.f32.mrf.mxu2 }
 0x5a4   : > { %v1924_v14 = vadd.f32 %v1921_v13, %v1814_v60  ;;  %v1927_v49 = vpack.c.bf16 %v1921_v13, %v1921_v13 }
 0x5a6   : > { %v1933_v8 = vunpack.c.l.b16 %v1927_v49 }
 0x5a9   : > { %v3051_v12 = vpop.eup %3050 }
 0x5aa   : > { %v1812_v18 = vmul.f32 %v3051_v12, %v3905_v27  ;;  %v1807_v19 = vpop.xlane.xlu2 %1806 }
 0x5ab   : > { %3052 = vrcp.f32 %v1807_v19  ;;  %2759 = vmatmul.msk.bf16.gmra.mxu2 %vm1439_vm4, %v1717_v24 }
 0x5ac   : > { %v1818_v31 = vpack.c.bf16 %v1812_v18, %v1812_v18  ;;  %3054 = vpow2.f32 %v2017_v6  ;;  %v1815_v50 = vadd.f32 %v1812_v18, %v1702_v59 }
 0x5ae   : > { %v1824_v23 = vunpack.c.l.b16 %v1818_v31 }
 0x5b0   : > { %v1826_v20 = vpack.c.b16 %v1824_v23, %v1823_v22 }
 0x5b1   : > { %v3053_v16 = vpop.eup %3052 }
 0x5b2   : > { %2762 = vmatmul.msk.bf16.vlgmr.msra.gmra.mxu0 %vm1439_vm4, %v1826_v20  ;;  %v1813_v28 = vmul.f32 %v3053_v16, %v3909_v29  ;;  %v3953_v30 = vpop.eup %3054  ;;  %v2024_v37 = vpop.xlane.xlu1 %2023 }
 0x5b3   : > { %v2025_v33 = vsel %vm1676_vm5, %v3953_v30, 0.0  ;;  %3056 = vrcp.f32 %v2024_v37  ;;  %v2976_v37 = vld [vmem:[%s4278_s12] ss:$0 sm:$0xff] }
 0x5b4   : > { %v3951_v9 = vadd.f32 %v1813_v28, %v1703_v5  ;;  %v1819_v27 = vpack.c.bf16 %v1813_v28, %v1813_v28 }
 0x5b6   : > { %v1825_v34 = vunpack.c.l.b16 %v1819_v27 }
 0x5b8   : > { %v1827_v26 = vpack.c.b16 %v1825_v34, %v1825_v34 }
 0x5b9   : > { %v3057_v29 = vpop.eup %3056 }
 0x5ba   : > { %v2032_v40 = vmul.f32 %v3057_v29, %v3914_v39 }
 0x5bc   : > { %v2038_v56 = vpack.c.bf16 %v2032_v40, %v2032_v40 }
 0x5be   : > { %v2044_v58 = vunpack.c.l.b16 %v2038_v56 }
 0x5c0   : > { %2026 = vadd.xlane.f32.xlu2 %v2025_v33  ;;  %v1476_v33 = vadd.f32 %v2976_v37, %v1475_v7  ;;  %v3332_v7 = vmov 32.0  }
 0x5c2   : > { %v1914_v32 = vpop.xlane.xlu0 %1913  ;;  %2763 = vmatmul.msk.bf16.gmra.mxu0 %vm1439_vm4, %v1827_v26  ;;  %v1474_v26 = vadd.f32 %v2976_v37, %v1473_v54 }
 0x5c3   : > { %3058 = vrcp.f32 %v1914_v32  ;;  %v3992_v32 = vld [vmem:[%s3583_s7 + $0x8] sm:$0xff] }
 0x5c4   : > { %v3995_v29 = vadd.f32 %v3992_v32, %v1476_v33 }
 0x5c9   : > { %v3059_v35 = vpop.eup %3058 }
 0x5ca   : > { %v1922_v25 = vmul.f32 %v3059_v35, %v3922_v41  ;;  %v1917_v48 = vpop.xlane.xlu0 %1916  ;;  %v3998_v35 = vld [vmem:[%s3583_s7] sm:$0xff]  ;;  %s4282_s7 = sld [smem:[#allocation44_spill]] }
 0x5cc   : > { %v1925_v42 = vadd.f32 %v1922_v25, %v1815_v50  ;;  %v1928_v21 = vpack.c.bf16 %v1922_v25, %v1922_v25  ;;  %v1480_v50 = vadd.f32 %v3998_v35, %v1474_v26  ;;  %v1487_v25 = vsel %vm989_vm0, %v3995_v29, 0.0 }
 0x5ce   : > { %v2035_v44 = vadd.f32 %v2032_v40, %v1925_v42  ;;  %v1934_v39 = vunpack.c.l.b16 %v1928_v21  ;;  %v1484_v40 = vsel %vm989_vm0, %v1480_v50, 0.0 }
 0x5d0   : > { %v2162_v45 = vmul.f32 0.25, %v2035_v44  ;;  %v1936_v55 = vpack.c.b16 %v1934_v39, %v1933_v8 }
 0x5d2   : > { %2462 = vst.msk [vmem:[%s3965_s10 + $0x8] sm:$0xff] %vm1439_vm4, %v2162_v45  ;;  %v2830_v45 = vld [vmem:[#allocation5 + $0x8] sm:$0xff] }
 0x5d3   : > { %2149 = vmatpush.bf16.msrb.mxu3 %v2830_v45 }
 0x5ea   : > { %v2021_v46 = vpop.xlane.xlu2 %2020 }
 0x5eb   : > { %3060 = vrcp.f32 %v2021_v46  ;;  %v2829_v46 = vld [vmem:[#allocation5] sm:$0xff] }
 0x5ec   : > { %3062 = vrcp.f32 %v1917_v48  ;;  %2150 = vmatpush.bf16.msrb.mxu3 %v2829_v46 }
 0x5f1   : > { %v3061_v41 = vpop.eup %3060 }
 0x5f2   : > { %v2031_v52 = vmul.f32 %v3061_v41, %v3931_v51  ;;  %v1939_v15 = vpop.permute.xlu2 %1938  ;;  %v3063_v57 = vpop.eup %3062 }
 0x5f3   : > { %1954 = vmatpush.bf16.msra.mxu2 %v1939_v15  ;;  %v1923_v61 = vmul.f32 %v3063_v57, %v3926_v36 }
 0x5f4   : > { %v2034_v43 = vadd.f32 %v2031_v52, %v1924_v14  ;;  %v2037_v53 = vpack.c.bf16 %v2031_v52, %v2031_v52 }
 0x5f5   : > { %v1929_v51 = vpack.c.bf16 %v1923_v61, %v1923_v61  ;;  %v1926_v12 = vadd.f32 %v1923_v61, %v3951_v9 }
 0x5f6   : > { %v2161_v59 = vmul.f32 0.25, %v2034_v43  ;;  %2766 = vmatmul.msk.bf16.vlgmr.msra.gmra.mxu2 %vm1439_vm4, %v1936_v55  ;;  %v2043_v60 = vunpack.c.l.b16 %v2037_v53 }
 0x5f7   : > { %v1935_v1 = vunpack.c.l.b16 %v1929_v51 }
 0x5f8   : > { %2461 = vst.msk [vmem:[%s3965_s10] sm:$0xff] %vm1439_vm4, %v2161_v59  ;;  %v2046_v0 = vpack.c.b16 %v2044_v58, %v2043_v60 }
 0x5f9   : > { %v1937_v2 = vpack.c.b16 %v1935_v1, %v1935_v1 }
 0x5fa   : > { %v2049_v62 = vpop.permute.xlu2 %2048 }
 0x5fb   : > { %2064 = vmatpush.bf16.msrb.mxu0 %v2049_v62 }
 0x5fe   : > { %2770 = vmatmul.msk.bf16.vlgmr.msrb.gmra.mxu0 %vm1439_vm4, %v2046_v0 }
 0x606   : > { %2767 = vmatmul.msk.bf16.gmra.mxu2 %vm1439_vm4, %v1937_v2 }
 0x61e   : > { %v1736_v10 = vpop.f32.mrf.mxu2 }
 0x626   : > { %v1738_v5 = vpop.f32.mrf.mxu2 }
 0x62e   : > { %v3976_v3 = vpop.f32.mrf.mxu2 }
 0x62f   : > { %v1846_v63 = vpop.f32.mrf.mxu0 }
 0x633   : > { %v2027_v36 = vpop.xlane.xlu2 %2026 }
 0x634   : > { %3064 = vrcp.f32 %v2027_v36 }
 0x635   : > { %3066 = vrcp.f32 %v3332_v7 }
 0x636   : > { %v1743_v13 = vpop.f32.mrf.mxu2 }
 0x637   : > { %v1848_v4 = vpop.f32.mrf.mxu0 }
 0x638   : > { %v2955_v14 = vpack.i.bf16 %v1848_v4, %v1846_v63 }
 0x63a   : > { %v3065_v47 = vpop.eup %3064  ;;  %2956 = vrot.lane.b32.xlu0 %v2955_v14, %s4227_s25 }
 0x63b   : > { %v2033_v24 = vmul.f32 %v3065_v47, %v3953_v30 }
 0x63d   : > { %v2036_v11 = vadd.f32 %v2033_v24, %v1926_v12  ;;  %v2039_v18 = vpack.c.bf16 %v2033_v24, %v2033_v24 }
 0x63f   : > { %v1851_v19 = vpop.f32.mrf.mxu0  ;;  %v2045_v31 = vunpack.c.l.b16 %v2039_v18  ;;  %v2163_v38 = vmul.f32 0.25, %v2036_v11  ;;  %v3084_v11 = vld [vmem:[%s3590_s6] sm:$0xff] }
 0x641   : > { %v2047_v22 = vpack.c.b16 %v2045_v31, %v2045_v31  ;;  %2463 = vst.msk [vmem:[%s3965_s10 + $0x10] sm:$0x1] %vm1676_vm5, %v2163_v38 }
 0x643   : > { %2771 = vmatmul.msk.bf16.gmra.mxu0 %vm1439_vm4, %v2047_v22 }
 0x647   : > { %v1853_v23 = vpop.f32.mrf.mxu0 }
 0x679   : > { %v1956_v20 = vpop.f32.mrf.mxu2 }
 0x67b   : > { %v2066_v16 = vpop.f32.mrf.mxu0 }
 0x681   : > { %v1958_v6 = vpop.f32.mrf.mxu2 }
 0x682   : > { %v2960_v28 = vpack.i.bf16 %v1958_v6, %v1956_v20  ;;  %v3085_v6 = vld [vmem:[%s3590_s6 + $0x8] sm:$0xff] }
 0x683   : > { %v2068_v9 = vpop.f32.mrf.mxu0 }
 0x684   : > { %v2965_v27 = vpack.i.bf16 %v2068_v9, %v2066_v16  ;;  %2961 = vrot.lane.b32.xlu1 %v2960_v28, %s3329_s30 }
 0x686   : > { %2966 = vrot.lane.b32.xlu0 %v2965_v27, %s3331_s27 }
 0x689   : > { %v1961_v30 = vpop.f32.mrf.mxu2 }
 0x68c   : > { %2094 = vrot.lane.b32.xlu1 %v1961_v30, %s3329_s30  ;;  %s2503_s30 = scalar_lea.hbm %s4282_s7, %s2837_s24 }
 0x68e   : > { %2082 = vrot.lane.b32.xlu0 %v1851_v19, %s4227_s25 }
 0x691   : > { %v1963_v34 = vpop.f32.mrf.mxu2 }
 0x6ac   : > { %v2957_v21 = vpop.permute.xlu0 %2956 }
 0x6ad   : > { %v2959_v48 = vunpack.i.h.bf16 %v2957_v21  ;;  %v2958_v49 = vunpack.i.l.bf16 %v2957_v21 }
 0x6af   : > { %v2111_v52 = vsel %vm1066_vm1, %v1736_v10, %v2958_v49  ;;  %v2112_v15 = vsel %vm1066_vm1, %v1738_v5, %v2959_v48  ;;  %v3067_v10 = vpop.eup %3066 }
 0x6b0   : > { %v1491_v5 = vmul.f32 32.0, %v3067_v10  ;;  %vm1495_vm7 = vweird.f32 %v3067_v10 }
 0x6b2   : > { %v1492_v63 = vsub.f32 1.0, %v1491_v5 }
 0x6b4   : > { %v1493_v36 = vmul.f32 %v3067_v10, %v1492_v63 }
 0x6b6   : > { %1488 = vadd.xlane.f32.xlu1 %v1487_v25  ;;  %v1494_v13 = vadd.f32 %v3067_v10, %v1493_v36  ;;  %v2978_v36 = vld [vmem:[%s4280_s14] ss:$0 sm:$0xff] }
 0x6b8   : > { %1485 = vadd.xlane.f32.xlu0 %v1484_v40  ;;  %v4020_v14 = vsel %vm1495_vm7, %v3067_v10, %v1494_v13 }
 0x6c0   : > { %v2071_v42 = vpop.f32.mrf.mxu0 }
 0x6c1   : > { %2106 = vrot.lane.b32.xlu2 %v2071_v42, %s3331_s27  ;;  %s2506_s27 = sshll.u32 %s2503_s30, 4  ;;  %s2507_s27 = int_to_ptr.hbm [resolvable:$true] %s2506_s27 }
 0x6c2   : > { %s3221_s8 = sshra.s32 %s2507_s27, 4  ;;  %s3222_s8 = int_to_ptr.hbm [resolvable:$true] %s3221_s8 }
 0x6c3   : > { %s3223_s25 = scalar_lea.hbm %s3222_s8, 16  ;;  %p3228_p3 = scmp.lt.s32.totalorder %s3222_s8, %s4282_s7 }
 0x6c4   : > { %p3224_p0 = scmp.ne.s32.totalorder %s3222_s8, %s3223_s25 }
 0x6c6   : > { %p3225_p1 = pnand %p3224_p0, %p3517_p5 }
 0x6c8   : > { %v2073_v44 = vpop.f32.mrf.mxu0  ;;  %p3226_p2 = pneg %p3225_p1 }
 0x6f6   : > { %v2962_v39 = vpop.permute.xlu1 %2961 }
 0x6f7   : > { %v2964_v41 = vunpack.i.h.bf16 %v2962_v39  ;;  %v2963_v8 = vunpack.i.l.bf16 %v2962_v39 }
 0x6f8   : > { %v2967_v43 = vpop.permute.xlu0 %2966 }
 0x6f9   : > { %v2115_v53 = vsel %vm1439_vm4, %v2112_v15, %v2964_v41  ;;  %v2114_v55 = vsel %vm1439_vm4, %v2111_v52, %v2963_v8  ;;  %v2969_v57 = vunpack.i.h.bf16 %v2967_v43  ;;  %v2968_v56 = vunpack.i.l.bf16 %v2967_v43 }
 0x6fb   : > { %v2117_v59 = vsel %vm1442_vm6, %v2114_v55, %v2968_v56  ;;  %v2118_v60 = vsel %vm1442_vm6, %v2115_v53, %v2969_v57 }
 0x6fc   : > { %v2120_v61 = vpack.c.bf16 %v2118_v60, %v2117_v59 }
 0x6fe   : > { %2780 = vmatmul.msk.bf16.vlgmr.msrb.gmra.mxu3 %vm989_vm0, %v2120_v61  ;;  %v2095_v0 = vpop.permute.xlu1 %2094 }
 0x700   : > { %v2083_v58 = vpop.permute.xlu0 %2082 }
 0x701   : > { %v2113_v62 = vsel %vm1066_vm1, %v3976_v3, %v2083_v58  ;;  %v2977_v3 = vld [vmem:[%s4279_s13] ss:$0 sm:$0xff]  ;;  %s3227_s13 = scalar_lea.hbm %s4282_s7, 32 }
 0x702   : > { %v2116_v1 = vsel %vm1439_vm4, %v2113_v62, %v2095_v0  ;;  %p3229_p4 = scmp.lt.s32.totalorder %s3227_s13, %s3223_s25 }
 0x704   : > { %p3230_p7 = por %p3229_p4, %p3228_p3 }
 0x706   : > { %p3231_p8 = pnand %p3230_p7, %p3226_p2 }
 0x71b   : > { %v2107_v51 = vpop.permute.xlu2 %2106 }
 0x71c   : > { %v2119_v2 = vsel %vm1442_vm6, %v2116_v1, %v2107_v51 }
 0x71d   : > { %v2121_v54 = vpack.c.bf16 %v2119_v2, %v2119_v2 }
 0x71f   : > { %2781 = vmatmul.msk.bf16.gmra.mxu3 %vm989_vm0, %v2121_v54 }
 0x729   : > { %v1489_v38 = vpop.xlane.xlu1 %1488 }
 0x72a   : > { %v1498_v23 = vmul.f32 %v4020_v14, %v1489_v38 }
 0x72b   : > { %v1486_v4 = vpop.xlane.xlu0 %1485 }
 0x72c   : > { %v1497_v12 = vmul.f32 %v4020_v14, %v1486_v4  ;;  %v1500_v9 = vsub.f32 %v3995_v29, %v1498_v23 }
 0x72e   : > { %v4024_v19 = vsub.f32 %v1480_v50, %v1497_v12  ;;  %v1502_v34 = vmul.f32 %v1500_v9, %v1500_v9  ;;  %v3086_v50 = vld [vmem:[%s3590_s6 + $0x10] sm:$0x1]  ;;  %s2504_s6 = sshll.u32 %s3770_s9, 4  ;;  %s2505_s6 = int_to_ptr.vmem [resolvable:$true] %s2504_s6 }
 0x730   : > { %v1501_v16 = vmul.f32 %v4024_v19, %v4024_v19  ;;  %v1506_v37 = vsel %vm989_vm0, %v1502_v34, 0.0 }
 0x732   : > { %v1503_v30 = vsel %vm989_vm0, %v1501_v16, 0.0 }
 0x781   : > { %v2152_v47 = vpop.f32.mrf.mxu3 }
 0x782   : > { %v2153_v24 = vadd.f32 %v2977_v3, %v2152_v47 }
 0x784   : > { %v2164_v18 = vadd.f32 %v3084_v11, %v2153_v24  ;;  %v2979_v11 = vld [vmem:[#allocation7] ss:$0 sm:$0xff] }
 0x786   : > { %v2169_v31 = vsel %vm989_vm0, %v2164_v18, 0.0 }
 0x787   : > { %2170 = vadd.xlane.f32.xlu0 %v2169_v31 }
 0x789   : > { %v2154_v22 = vpop.f32.mrf.mxu3 }
 0x78a   : > { %v2155_v20 = vadd.f32 %v2977_v3, %v2154_v22 }
 0x78c   : > { %v2165_v28 = vadd.f32 %v3085_v6, %v2155_v20 }
 0x78e   : > { %v2172_v27 = vsel %vm989_vm0, %v2165_v28, 0.0 }
 0x78f   : > { %2173 = vadd.xlane.f32.xlu1 %v2172_v27  ;;  %1504 = vadd.xlane.f32.xlu0 %v1503_v30 }
 0x797   : > { %1507 = vadd.xlane.f32.xlu1 %v1506_v37 }
 0x7a2   : > { %v2157_v33 = vpop.f32.mrf.mxu3 }
 0x7a3   : > { %v2158_v26 = vadd.f32 %v2977_v3, %v2157_v33 }
 0x7a5   : > { %v2166_v25 = vadd.f32 %v3086_v50, %v2158_v26 }
 0x7a7   : > { %v2176_v40 = vsel %vm2175_vm8, %v2166_v25, 0.0 }
 0x7a8   : > { %2177 = vadd.xlane.f32.xlu2 %v2176_v40 }
 0x7aa   : > { %v2159_v42 = vpop.f32.mrf.mxu3 }
 0x7fa   : > { %v2171_v29 = vpop.xlane.xlu0 %2170 }
 0x7fb   : > { %v2179_v44 = vmul.f32 %v2171_v29, %v4020_v14 }
 0x7fd   : > { %v4038_v45 = vsub.f32 %v2164_v18, %v2179_v44  ;;  %v2250_v44 = vld [vmem:[%s4198_s17] sm:$0xff] }
 0x7ff   : > { %v2185_v46 = vmul.f32 %v4038_v45, %v4038_v45 }
 0x801   : > { %v2188_v21 = vsel %vm989_vm0, %v2185_v46, 0.0  ;;  %v2276_v46 = vld [vmem:[%s4200_s19] sm:$0xff] }
 0x802   : > { %v2174_v48 = vpop.xlane.xlu1 %2173  ;;  %2189 = vadd.xlane.f32.xlu1 %v2188_v21  ;;  %v1505_v49 = vpop.xlane.xlu0 %1504 }
 0x803   : > { %v2180_v39 = vmul.f32 %v2174_v48, %v4020_v14  ;;  %v1509_v41 = vmul.f32 %v1505_v49, %v4020_v14 }
 0x805   : > { %v4045_v8 = vsub.f32 %v2165_v28, %v2180_v39  ;;  %v1511_v52 = vadd.f32 1e-05, %v1509_v41 }
 0x807   : > { %3068 = vrsqrt.f32 %v1511_v52  ;;  %v2186_v15 = vmul.f32 %v4045_v8, %v4045_v8  ;;  %vm1519_vm10 = vweird.f32 %v1511_v52 }
 0x809   : > { %v2191_v43 = vsel %vm989_vm0, %v2186_v15, 0.0 }
 0x80a   : > { %2192 = vadd.xlane.f32.xlu2 %v2191_v43  ;;  %v1508_v53 = vpop.xlane.xlu1 %1507 }
 0x80b   : > { %v1510_v55 = vmul.f32 %v1508_v53, %v4020_v14 }
 0x80d   : > { %v3069_v57 = vpop.eup %3068  ;;  %v1512_v56 = vadd.f32 1e-05, %v1510_v55 }
 0x80e   : > { %v1514_v59 = vmul.f32 %v3069_v57, %v1511_v52  ;;  %vm1520_vm9 = vweird.f32 %v3069_v57 }
 0x80f   : > { %3070 = vrsqrt.f32 %v1512_v56  ;;  %vm1521_vm11 = vmor %vm1519_vm10, %vm1520_vm9  ;;  %vm1529_vm13 = vweird.f32 %v1512_v56 }
 0x810   : > { %v1515_v60 = vmul.f32 %v3069_v57, %v1514_v59 }
 0x812   : > { %v1516_v61 = vmul.f32 0.5, %v1515_v60 }
 0x814   : > { %v1517_v58 = vsub.f32 1.5, %v1516_v61 }
 0x815   : > { %v3071_v62 = vpop.eup %3070 }
 0x816   : > { %v1518_v0 = vmul.f32 %v3069_v57, %v1517_v58  ;;  %v1524_v51 = vmul.f32 %v3071_v62, %v1512_v56  ;;  %vm1530_vm12 = vweird.f32 %v3071_v62  ;;  %v2980_v58 = vld [vmem:[%s4280_s14] ss:$0 sm:$0xff] }
 0x817   : > { %vm1531_vm14 = vmor %vm1529_vm13, %vm1530_vm12 }
 0x818   : > { %v1525_v1 = vmul.f32 %v3071_v62, %v1524_v51  ;;  %v1522_v2 = vsel %vm1521_vm11, %v3069_v57, %v1518_v0 }
 0x819   : > { %v1533_v63 = vmul.f32 %v1522_v2, %v4024_v19 }
 0x81a   : > { %v1526_v54 = vmul.f32 0.5, %v1525_v1  ;;  %v2981_v1 = vld [vmem:[#allocation7] ss:$0 sm:$0xff] }
 0x81b   : > { %v2178_v7 = vpop.xlane.xlu2 %2177  ;;  %v1538_v24 = vmul.f32 %v2978_v36, %v1533_v63  ;;  %2279 = vperm.xlu1 %2971, %v2276_v46  }
 0x81c   : > { %v1527_v10 = vsub.f32 1.5, %v1526_v54  ;;  %v2181_v5 = vmul.f32 %v2178_v7, %v4020_v14 }
 0x81d   : > { %v1543_v31 = vadd.f32 %v2979_v11, %v1538_v24 }
 0x81e   : > { %v1528_v13 = vmul.f32 %v3071_v62, %v1527_v10  ;;  %v4056_v3 = vsub.f32 %v2166_v25, %v2181_v5 }
 0x820   : > { %v1532_v4 = vsel %vm1531_vm14, %v3071_v62, %v1528_v13  ;;  %v2187_v47 = vmul.f32 %v4056_v3, %v4056_v3  ;;  %v2273_v13 = vld [vmem:[%s4199_s18] sm:$0xf] }
 0x821   : > { %v1534_v12 = vmul.f32 %v1532_v4, %v1500_v9  ;;  %v2248_v9 = vld [vmem:[%s4197_s16] sm:$0xf] }
 0x822   : > { %v2194_v18 = vsel %vm2175_vm8, %v2187_v47, 0.0  ;;  %v2831_v47 = vld [vmem:[#allocation8] sm:$0xff] }
 0x823   : > { %2195 = vadd.xlane.f32.xlu0 %v2194_v18  ;;  %v1539_v19 = vmul.f32 %v2978_v36, %v1534_v12 }
 0x825   : > { %v1544_v38 = vadd.f32 %v2979_v11, %v1539_v19 }
 0x827   : > { %v2249_v22 = vpack.c.bf16 %v1544_v38, %v1543_v31 }
 0x829   : > { %2266 = vmatpush.bf16.msrb.mxu2 %v2249_v22 }
 0x82c   : > { %2782 = vmatmul.msk.bf16.vlgmr.msrb.gmra.mxu2 %vm1439_vm4, %v2248_v9 }
 0x837   : > { %2253 = vperm.xlu0 %2970, %v2250_v44  }
 0x875   : > { %v2190_v20 = vpop.xlane.xlu1 %2189 }
 0x876   : > { %v2197_v6 = vmul.f32 %v2190_v20, %v4020_v14 }
 0x878   : > { %v2200_v27 = vadd.f32 1e-05, %v2197_v6  ;;  %v2835_v6 = vld [vmem:[%s4203_s22 + $0x10] sm:$0xff] }
 0x87a   : > { %vm2209_vm5 = vweird.f32 %v2200_v27 }
 0x87d   : > { %v2193_v23 = vpop.xlane.xlu2 %2192 }
 0x87e   : > { %v2198_v16 = vmul.f32 %v2193_v23, %v4020_v14 }
 0x880   : > { %v2201_v28 = vadd.f32 1e-05, %v2198_v16  ;;  %v2836_v16 = vld [vmem:[%s4203_s22 + $0x18] sm:$0xff] }
 0x881   : > { %2389 = vmatpush.bf16.msra.mxu0 %v2836_v16 }
 0x882   : > { %3072 = vrsqrt.f32 %v2201_v28  ;;  %vm2219_vm3 = vweird.f32 %v2201_v28 }
 0x883   : > { %3074 = vrsqrt.f32 %v2200_v27 }
 0x885   : > { %2390 = vmatpush.bf16.msra.mxu0 %v2835_v6 }
 0x888   : > { %v3073_v30 = vpop.eup %3072 }
 0x889   : > { %v3075_v34 = vpop.eup %3074  ;;  %v2214_v37 = vmul.f32 %v3073_v30, %v2201_v28  ;;  %vm2220_vm15 = vweird.f32 %v3073_v30 }
 0x88a   : > { %v2204_v50 = vmul.f32 %v3075_v34, %v2200_v27  ;;  %vm2210_vm1 = vweird.f32 %v3075_v34  ;;  %vm2221_vm6 = vmor %vm2219_vm3, %vm2220_vm15  ;;  %v2982_v27 = vld [vmem:[%s4202_s21] ss:$0 sm:$0xff] }
 0x88b   : > { %v2215_v40 = vmul.f32 %v3073_v30, %v2214_v37  ;;  %vm2211_vm7 = vmor %vm2209_vm5, %vm2210_vm1 }
 0x88c   : > { %v2205_v42 = vmul.f32 %v3075_v34, %v2204_v50  ;;  %v2983_v50 = vld [vmem:[%s4204_s23] ss:$0 sm:$0xff] }
 0x88d   : > { %v2216_v29 = vmul.f32 0.5, %v2215_v40 }
 0x88e   : > { %v2206_v21 = vmul.f32 0.5, %v2205_v42 }
 0x88f   : > { %v2217_v49 = vsub.f32 1.5, %v2216_v29 }
 0x890   : > { %v2207_v41 = vsub.f32 1.5, %v2206_v21 }
 0x891   : > { %v2218_v15 = vmul.f32 %v3073_v30, %v2217_v49 }
 0x892   : > { %v2208_v53 = vmul.f32 %v3075_v34, %v2207_v41 }
 0x893   : > { %v2222_v57 = vsel %vm2221_vm6, %v3073_v30, %v2218_v15 }
 0x894   : > { %v2212_v59 = vsel %vm2211_vm7, %v3075_v34, %v2208_v53  ;;  %v2234_v61 = vmul.f32 %v2222_v57, %v4045_v8 }
 0x895   : > { %v2233_v0 = vmul.f32 %v2212_v59, %v4038_v45 }
 0x896   : > { %v2196_v33 = vpop.xlane.xlu0 %2195  ;;  %v2240_v54 = vmul.f32 %v2980_v58, %v2234_v61 }
 0x897   : > { %v2199_v26 = vmul.f32 %v2196_v33, %v4020_v14  ;;  %v2239_v10 = vmul.f32 %v2980_v58, %v2233_v0 }
 0x898   : > { %v2246_v63 = vadd.f32 %v2981_v1, %v2240_v54 }
 0x899   : > { %v2202_v25 = vadd.f32 1e-05, %v2199_v26  ;;  %v2245_v36 = vadd.f32 %v2981_v1, %v2239_v10 }
 0x89b   : > { %3076 = vrsqrt.f32 %v2202_v25  ;;  %vm2229_vm8 = vweird.f32 %v2202_v25  ;;  %v2274_v8 = vpack.c.bf16 %v2246_v63, %v2245_v36 }
 0x8a1   : > { %v3077_v48 = vpop.eup %3076 }
 0x8a2   : > { %v2224_v39 = vmul.f32 %v3077_v48, %v2202_v25  ;;  %vm2230_vm4 = vweird.f32 %v3077_v48 }
 0x8a3   : > { %vm2231_vm9 = vmor %vm2229_vm8, %vm2230_vm4 }
 0x8a4   : > { %v2225_v52 = vmul.f32 %v3077_v48, %v2224_v39 }
 0x8a6   : > { %v2226_v43 = vmul.f32 0.5, %v2225_v52 }
 0x8a8   : > { %v2227_v55 = vsub.f32 1.5, %v2226_v43 }
 0x8a9   : > { %v2254_v12 = vpop.permute.xlu0 %2253 }
 0x8aa   : > { %v2228_v56 = vmul.f32 %v3077_v48, %v2227_v55 }
 0x8ac   : > { %v2232_v60 = vsel %vm2231_vm9, %v3077_v48, %v2228_v56 }
 0x8ad   : > { %v2235_v62 = vmul.f32 %v2232_v60, %v4056_v3  ;;  %v2832_v3 = vld [vmem:[#allocation8 + $0x8] sm:$0xff] }
 0x8ae   : > { %2334 = vmatpush.bf16.msra.mxu2 %v2832_v3 }
 0x8af   : > { %v2241_v51 = vmul.f32 %v2980_v58, %v2235_v62  ;;  %v2268_v45 = vpop.f32.mrf.mxu2 }
 0x8b0   : > { %v2269_v24 = vadd.f32 %v2268_v45, %v2254_v12 }
 0x8b1   : > { %v2247_v2 = vadd.f32 %v2981_v1, %v2241_v51 }
 0x8b2   : > { %2335 = vmatpush.bf16.msra.mxu2 %v2831_v47  ;;  %v2272_v11 = vmax.f32 %v2269_v24, 0.0 }
 0x8b3   : > { %v2275_v7 = vpack.c.bf16 %v2247_v2, %v2247_v2 }
 0x8b4   : > { %v2302_v38 = vmul.f32 %v3998_v35, %v2272_v11  ;;  %v2834_v35 = vld [vmem:[%s4203_s22 + $0x8] sm:$0xff] }
 0x8b5   : > { %v2286_v5 = vand.u32 %v2275_v7, %v3678_v17  ;;  %v2280_v17 = vpop.permute.xlu1 %2279  ;;  %2391 = vmatpush.bf16.msra.mxu0 %v2834_v35 }
 0x8b7   : > { %2294 = vmatpush.bf16.msrb.mxu1 %v2286_v5  ;;  %v2270_v4 = vpop.f32.mrf.mxu2 }
 0x8bb   : > { %2295 = vmatpush.bf16.msrb.mxu1 %v2274_v8 }
 0x8be   : > { %2783 = vmatmul.msk.bf16.vlgmr.msrb.gmra.mxu1 %vm1092_vm2, %v2273_v13  ;;  %vm2381_vm2 = vcmask 523264  }
 0x93b   : > { %v2297_v18 = vpop.f32.mrf.mxu1 }
 0x93c   : > { %v2298_v19 = vadd.f32 %v2297_v18, %v2280_v17 }
 0x93e   : > { %v2301_v31 = vmax.f32 %v2298_v19, 0.0 }
 0x940   : > { %v2303_v22 = vmul.f32 %v3992_v32, %v2301_v31  ;;  %v2833_v32 = vld [vmem:[%s4203_s22] sm:$0xff] }
 0x941   : > { %2392 = vmatpush.bf16.msra.mxu0 %v2833_v32 }
 0x942   : > { %v2308_v23 = vpack.c.bf16 %v2303_v22, %v2302_v38 }
 0x943   : > { %v2299_v20 = vpop.f32.mrf.mxu1 }
 0x944   : > { %2792 = vmatmul.msk.bf16.vlgmr.msra.gmra.mxu2 %vm989_vm0, %v2308_v23 }
 0x9c7   : > { %v2337_v28 = vpop.f32.mrf.mxu2 }
 0x9c8   : > { %v2338_v9 = vadd.f32 %v2982_v27, %v2337_v28 }
 0x9ca   : > { %v2342_v37 = vmax.f32 %v2338_v9, 0.0 }
 0x9cf   : > { %v2339_v30 = vpop.f32.mrf.mxu2 }
 0x9d0   : > { %v2340_v34 = vadd.f32 %v2982_v27, %v2339_v30 }
 0x9d2   : > { %v2343_v33 = vmax.f32 %v2340_v34, 0.0 }
 0x9d4   : > { %v2352_v26 = vpack.c.bf16 %v2343_v33, %v2342_v37 }
 0x9d6   : > { %2809 = vmatmul.msk.bf16.vlgmr.msra.gmra.mxu0 %vm2381_vm2, %v2352_v26 }
 0xa53   : > { %v2394_v25 = vpop.f32.mrf.mxu0 }
 0xa54   : > { %v2395_v40 = vadd.f32 %v2983_v50, %v2394_v25 }
 0xa56   : > { %v2399_v42 = vadd.f32 %v2395_v40, %v2302_v38 }
 0xa58   : > { %v2403_v29 = vsel %vm989_vm0, %v2399_v42, 0.0 }
 0xa59   : > { %2404 = vadd.xlane.f32.xlu2 %v2403_v29 }
 0xa5b   : > { %v2396_v44 = vpop.f32.mrf.mxu0 }
 0xa5c   : > { %v2397_v46 = vadd.f32 %v2983_v50, %v2396_v44 }
 0xa5e   : > { %v2400_v21 = vadd.f32 %v2397_v46, %v2303_v22 }
 0xa60   : > { %v2406_v48 = vsel %vm989_vm0, %v2400_v21, 0.0 }
 0xa61   : > { %2407 = vadd.xlane.f32.xlu2 %v2406_v48 }
 0xacc   : > { %v2405_v49 = vpop.xlane.xlu2 %2404 }
 0xacd   : > { %v2409_v39 = vmul.f32 %v2405_v49, %v4020_v14 }
 0xacf   : > { %v2411_v41 = vsub.f32 %v2399_v42, %v2409_v39 }
 0xad1   : > { %v2413_v52 = vmul.f32 %v2411_v41, %v2411_v41 }
 0xad3   : > { %v2415_v15 = vsel %vm989_vm0, %v2413_v52, 0.0 }
 0xad4   : > { %2416 = vadd.xlane.f32.xlu2 %v2415_v15  ;;  %v2408_v43 = vpop.xlane.xlu2 %2407 }
 0xad5   : > { %v2410_v53 = vmul.f32 %v2408_v43, %v4020_v14 }
 0xad7   : > { %v2412_v55 = vsub.f32 %v2400_v21, %v2410_v53 }
 0xad9   : > { %v2414_v57 = vmul.f32 %v2412_v55, %v2412_v55 }
 0xadb   : > { %v2418_v56 = vsel %vm989_vm0, %v2414_v57, 0.0 }
 0xadc   : > { %2419 = vadd.xlane.f32.xlu1 %v2418_v56 }
 0xadd   : > { %3234 = shalt.err (!%p3231_p8)
}
 0xade   : > { %s3333_s9 = smov 128   ;;  %s4283_s2 = smov 8  }
 0xadf   : > { %2857 = dma.vmem_to_hbm [thread:$0]  (%p3517_p5), %s2505_s6, 256, %s2507_s27, %s2470_s1, %s3333_s9, %s3333_s9, %s4283_s2  }
 0xae0   : > { %s4284_s15 = sld [smem:[#allocation41_spill]]  ;;  %s4286_s12 = sshll.u32 %s3760_s4, 4 }
 0xae1   : > { %s4285_s25 = sld [smem:[#allocation42_spill]]  ;;  %s922_s30 = scalar_lea.vmem [#allocation10], %s4286_s12 }
 0xae2   : > { %s4287_s1 = sld [smem:[#allocation43_spill]]  ;;  %s2487_s13 = sshll.u32 %s922_s30, 4  ;;  %s2488_s13 = int_to_ptr.vmem [resolvable:$true] %s2487_s13 }
 0xae6   : > { %v2984_v36 = vld [vmem:[%s4284_s15] ss:$0 sm:$0xff]  ;;  %s2465_s15 = scalar_lea.sflag [#allocation4], %s3760_s4 }
 0xae7   : > { %v2985_v13 = vld [vmem:[%s4285_s25] ss:$0 sm:$0xff] }
 0xae8   : > { %s2486_s8 = scalar_lea.hbm %s4287_s1, %s2837_s24  ;;  %s3255_s25 = scalar_lea.hbm %s4287_s1, 32 }
 0xae9   : > { %s2489_s14 = sshll.u32 %s2486_s8, 4  ;;  %s2490_s14 = int_to_ptr.hbm [resolvable:$true] %s2489_s14 }
 0xaea   : > { %s3249_s11 = sshra.s32 %s2490_s14, 4  ;;  %s3250_s11 = int_to_ptr.hbm [resolvable:$true] %s3249_s11 }
 0xaeb   : > { %s3251_s0 = scalar_lea.hbm %s3250_s11, 16  ;;  %p3256_p12 = scmp.lt.s32.totalorder %s3250_s11, %s4287_s1 }
 0xaec   : > { %p3252_p9 = scmp.ne.s32.totalorder %s3250_s11, %s3251_s0  ;;  %p3257_p13 = scmp.lt.s32.totalorder %s3255_s25, %s3251_s0 }
 0xaee   : > { %p3253_p10 = pnand %p3252_p9, %p3517_p5  ;;  %p3258_p0 = por %p3257_p13, %p3256_p12 }
 0xaf0   : > { %p3254_p11 = pneg %p3253_p10 }
 0xaf2   : > { %p3259_p1 = pnand %p3258_p0, %p3254_p11 }
 0xb47   : > { %v2417_v59 = vpop.xlane.xlu2 %2416 }
 0xb48   : > { %v2421_v60 = vmul.f32 %v2417_v59, %v4020_v14 }
 0xb4a   : > { %v2423_v61 = vadd.f32 1e-05, %v2421_v60 }
 0xb4c   : > { %3078 = vrsqrt.f32 %v2423_v61  ;;  %vm2431_vm11 = vweird.f32 %v2423_v61 }
 0xb4f   : > { %v2420_v58 = vpop.xlane.xlu1 %2419 }
 0xb50   : > { %v2422_v62 = vmul.f32 %v2420_v58, %v4020_v14 }
 0xb52   : > { %v3079_v0 = vpop.eup %3078  ;;  %v2424_v51 = vadd.f32 1e-05, %v2422_v62 }
 0xb53   : > { %v2426_v1 = vmul.f32 %v3079_v0, %v2423_v61  ;;  %vm2432_vm10 = vweird.f32 %v3079_v0 }
 0xb54   : > { %3080 = vrsqrt.f32 %v2424_v51  ;;  %vm2433_vm12 = vmor %vm2431_vm11, %vm2432_vm10  ;;  %vm2441_vm14 = vweird.f32 %v2424_v51 }
 0xb55   : > { %v2427_v2 = vmul.f32 %v3079_v0, %v2426_v1 }
 0xb57   : > { %v2428_v54 = vmul.f32 0.5, %v2427_v2 }
 0xb59   : > { %v2429_v7 = vsub.f32 1.5, %v2428_v54 }
 0xb5a   : > { %v3081_v10 = vpop.eup %3080 }
 0xb5b   : > { %v2430_v5 = vmul.f32 %v3079_v0, %v2429_v7  ;;  %v2436_v63 = vmul.f32 %v3081_v10, %v2424_v51  ;;  %vm2442_vm13 = vweird.f32 %v3081_v10 }
 0xb5c   : > { %vm2443_vm15 = vmor %vm2441_vm14, %vm2442_vm13 }
 0xb5d   : > { %v2434_v14 = vsel %vm2433_vm12, %v3079_v0, %v2430_v5  ;;  %v2437_v8 = vmul.f32 %v3081_v10, %v2436_v63 }
 0xb5e   : > { %v2445_v45 = vmul.f32 %v2434_v14, %v2411_v41 }
 0xb5f   : > { %v2438_v3 = vmul.f32 0.5, %v2437_v8 }
 0xb60   : > { %v2450_v4 = vmul.f32 %v2984_v36, %v2445_v45 }
 0xb61   : > { %v2439_v47 = vsub.f32 1.5, %v2438_v3 }
 0xb62   : > { %v2455_v12 = vadd.f32 %v2985_v13, %v2450_v4 }
 0xb63   : > { %v2440_v24 = vmul.f32 %v3081_v10, %v2439_v47 }
 0xb64   : > { %2457 = vst.msk [vmem:[%s922_s30] sm:$0xff] %vm989_vm0, %v2455_v12 }
 0xb65   : > { %v2444_v17 = vsel %vm2443_vm15, %v3081_v10, %v2440_v24 }
 0xb66   : > { %v2446_v11 = vmul.f32 %v2444_v17, %v2412_v55 }
 0xb68   : > { %v2451_v18 = vmul.f32 %v2984_v36, %v2446_v11 }
 0xb6a   : > { %v2456_v19 = vadd.f32 %v2985_v13, %v2451_v18 }
 0xb6c   : > { %2458 = vst.msk [vmem:[%s922_s30 + $0x8] sm:$0xff] %vm989_vm0, %v2456_v19 }
 0xb6d   : > { %3262 = shalt.err (!%p3259_p1)
}
 0xb6e   : > { %2856 = dma.vmem_to_hbm [thread:$0]  (%p3517_p5), %s2488_s13, 256, %s2490_s14, %s2465_s15, %s3333_s9, %s3333_s9, %s4283_s2  }
 0xb6f PF: > { %s4288_s4 = sld [smem:[#allocation20_spill]] }
 0xb70   : > { %s4289_s30 = sld [smem:[#allocation18_spill]] }
 0xb75   : > { %p2888_p2 = scmp.ge.s32.totalorder %s4288_s4, 2 }
 0xb76   : > { %s2524_s8 = sand.u32 1, %s4289_s30  }
 0xb77   : > { %p2874_p3 = pnand %p2888_p2, %p3521_p6  ;;  %s2525_s11 = scalar_lea.sflag [#allocation4], %s2524_s8 }
 0xb79   : > { %p2875_p4 = pneg %p2874_p3 }
 0xb7b   : > { %3292 = dma.done.wait (%p2875_p4), %s2525_s11, 256  }
 0xb7c   : > { %3294 = vsyncadd (%p2875_p4), %s2525_s11, 4294967040  ;;  %s2535_s0 = scalar_lea.sflag [#allocation12], %s2524_s8 }
 0xb7d   : > { %3296 = dma.done.wait (%p2875_p4), %s2535_s0, 256  }
 0xb7e   : > { %3298 = vsyncadd (%p2875_p4), %s2535_s0, 4294967040  ;;  %s4291_s30 = sld [smem:[#allocation21_spill]]  ;;  %s4294_s8 = smov %s3305_s5 }
 0xb7f   : > { %s4292_s10 = sld [smem:[#allocation19_spill]] }
 0xb80   : > { %s4293_s9 = sld [smem:[#allocation22_spill]] }
 0xb84   : > { %p45_p5 = scmp.ge.s32.totalorder %s4291_s30, 4  }
 0xb85   : > { %s4295_s5 = smov %s4292_s10 }
 0xb86   :  { %47 = sbr.rel (!%p45_p5) target bundleno = 29 (0x1d), region = 208 }
 0xb8b   :  { %2549 = vsyncpa [#allocation3], 1 }
 0xb8c   :  { %2551 = vsyncpa [#allocation3 + $0x1], 1 }
 0xb8d   :  { %2552 = vsyncpa [#allocation6], 1 }
 0xb8e   :  { %2553 = vsyncpa [#allocation9], 1 }
 0xb8f   :  { %2554 = vsyncpa [#allocation4], 1 }
 0xb90   :  { %2556 = vsyncpa [#allocation4 + $0x1], 1 }
 0xb91   :  { %2557 = vsyncpa [#allocation12], 1 }
 0xb92   :  { %2559 = vsyncpa [#allocation12 + $0x1], 1 }

</bundles_post_ra>
